<compile_context>
chip_gen: v7x
topology: tpu7x:2x2x1
jax: 0.10.0
libtpu: 0.0.40
codegen_flags: <defaults>
</compile_context>

<pallas_src>
import math
from functools import partial

import jax
import jax.numpy as jnp
from jax import lax
from jax.experimental import pallas as pl
from jax.experimental.pallas import tpu as pltpu


def block_kernel(x_q_ref, x_full_ref, ln1g_ref, ln1b_ref,
                 wq_ref, wk_ref, wv_ref, wproj_ref, bproj_ref,
                 ln2g_ref, ln2b_ref, w1_ref, b1_ref, w2_ref, b2_ref,
                 o_ref, k_scr, v_scr,
                 *, num_heads, head_dim, inv_skip_lam, eps):
    qi = pl.program_id(1)
    H, hd = num_heads, head_dim

    def layernorm(v, g, b):
        mu = jnp.mean(v, axis=-1, keepdims=True)
        var = jnp.mean((v - mu) ** 2, axis=-1, keepdims=True)
        return (v - mu) * lax.rsqrt(var + eps) * g + b

    # ---- K / V for the whole sequence: compute once per batch, keep in VMEM ----
    @pl.when(qi == 0)
    def _():
        xn_full = layernorm(x_full_ref[0], ln1g_ref[...], ln1b_ref[...])
        xn_full = xn_full.astype(jnp.bfloat16)
        N = xn_full.shape[0]
        k = jnp.dot(xn_full, wk_ref[...], preferred_element_type=jnp.float32)
        v = jnp.dot(xn_full, wv_ref[...], preferred_element_type=jnp.float32)
        # store head-major (H, N, hd) so the per-tile attention needs no relayout
        k_scr[...] = jnp.swapaxes(k.reshape(N, H, hd), 0, 1).astype(jnp.bfloat16)
        v_scr[...] = jnp.swapaxes(v.reshape(N, H, hd), 0, 1).astype(jnp.bfloat16)

    x = x_q_ref[0]                         # (tq, C) f32 query tile (+ residual)
    tq = x.shape[0]

    # ---------- Attention branch: x + attn(norm1(x)) * inv_skip_lam ----------
    xn_q = layernorm(x, ln1g_ref[...], ln1b_ref[...]).astype(jnp.bfloat16)
    # qk scale is already folded into Wq (done once in the wrapper)
    q = jnp.dot(xn_q, wq_ref[...], preferred_element_type=jnp.float32)   # (tq, H*hd)
    qh = jnp.swapaxes(q.astype(jnp.bfloat16).reshape(tq, H, hd), 0, 1)   # (H, tq, hd)
    kh = k_scr[...]                                                      # (H, N, hd)
    vh = v_scr[...]                                                      # (H, N, hd)

    # head-batched attention: scores (H, tq, N)
    s = jnp.einsum('hqd,hkd->hqk', qh, kh, preferred_element_type=jnp.float32)
    s = s - jnp.max(s, axis=-1, keepdims=True)
    p = jnp.exp(s)
    p = p * pl.reciprocal(jnp.sum(p, axis=-1, keepdims=True), approx=True)
    o = jnp.einsum('hqk,hkd->hqd', p.astype(jnp.bfloat16), vh,
                   preferred_element_type=jnp.float32)                   # (H, tq, hd)
    o = jnp.swapaxes(o, 0, 1).reshape(tq, H * hd).astype(jnp.bfloat16)   # (tq, H*hd)

    attn_out = (jnp.dot(o, wproj_ref[...], preferred_element_type=jnp.float32)
                + bproj_ref[...])
    x = x + attn_out * inv_skip_lam

    # ---------- MLP branch: x + mlp(norm2(x)) * inv_skip_lam ----------
    xn2 = layernorm(x, ln2g_ref[...], ln2b_ref[...]).astype(jnp.bfloat16)
    h1 = jnp.dot(xn2, w1_ref[...], preferred_element_type=jnp.float32) + b1_ref[...]
    # exact GELU (PyTorch nn.GELU default, erf-based) in f32
    h1 = 0.5 * h1 * (1.0 + lax.erf(h1 * (1.0 / math.sqrt(2.0))))
    h2 = (jnp.dot(h1.astype(jnp.bfloat16), w2_ref[...],
                  preferred_element_type=jnp.float32) + b2_ref[...])
    x = x + h2 * inv_skip_lam

    o_ref[0] = x.astype(o_ref.dtype)


def transformer_block(x, params, *, num_heads, head_dim, skip_lam=1.0,
                      eps=1e-5, q_tile=None):
    B, N, C = x.shape
    HD = num_heads * head_dim
    hidden = params["w1"].shape[1]
    if q_tile is None:
        q_tile = min(N, 128)
    assert N % q_tile == 0 and q_tile % 8 == 0
    NQ = N // q_tile

    scale = head_dim ** (-0.5)
    wdt = jnp.bfloat16
    # Split fused qkv weight; fold attention scale into Wq (one-time constant
    # transform); store all big matmul weights in bf16 (halves VMEM + DMA).
    wq = (params["wqkv"][:, 0 * HD:1 * HD] * scale).astype(wdt)
    wk = params["wqkv"][:, 1 * HD:2 * HD].astype(wdt)
    wv = params["wqkv"][:, 2 * HD:3 * HD].astype(wdt)
    wproj = params["wproj"].astype(wdt)
    w1 = params["w1"].astype(wdt)
    w2 = params["w2"].astype(wdt)

    kernel = partial(block_kernel, num_heads=num_heads, head_dim=head_dim,
                     inv_skip_lam=1.0 / skip_lam, eps=eps)

    def full(shape):
        # whole-array block, same tile for every grid step (not re-fetched)
        return pl.BlockSpec(shape, lambda b, qi: (0,) * len(shape))

    in_specs = [
        pl.BlockSpec((1, q_tile, C), lambda b, qi: (b, qi, 0)),  # query tile of x
        pl.BlockSpec((1, N, C), lambda b, qi: (b, 0, 0)),        # full seq (K/V src)
        full((1, C)), full((1, C)),                              # ln1 gamma, beta
        full((C, HD)), full((C, HD)), full((C, HD)),             # Wq, Wk, Wv (bf16)
        full((HD, C)), full((1, C)),                             # Wproj (bf16), bproj
        full((1, C)), full((1, C)),                              # ln2 gamma, beta
        full((C, hidden)), full((1, hidden)),                    # fc1 (bf16), b1
        full((hidden, C)), full((1, C)),                         # fc2 (bf16), b2
    ]
    out_spec = pl.BlockSpec((1, q_tile, C), lambda b, qi: (b, qi, 0))

    # Explicit VMEM budget: bf16 weights + double-buffered activation tiles +
    # persistent K/V scratch, with headroom.  Clamped to stay valid on
    # v5e/v6e (128 MiB physical) and v7x (64 MiB physical).
    bytes_weights = 2 * (3 * C * HD + HD * C + C * hidden + hidden * C)
    bytes_small = 4 * (6 * C + hidden)
    bytes_acts = 4 * (4 * q_tile * C + 2 * N * C) + 2 * (2 * N * HD)
    vmem_limit = int(max(32 << 20,
                         min(60 << 20,
                             4 * (bytes_weights + bytes_small + bytes_acts))))

    return pl.pallas_call(
        kernel,
        out_shape=jax.ShapeDtypeStruct((B, N, C), x.dtype),
        grid_spec=pltpu.PrefetchScalarGridSpec(
            num_scalar_prefetch=0,
            grid=(B, NQ),
            in_specs=in_specs,
            out_specs=out_spec,
            scratch_shapes=[pltpu.VMEM((num_heads, N, head_dim), jnp.bfloat16),
                            pltpu.VMEM((num_heads, N, head_dim), jnp.bfloat16)],
        ),
        compiler_params=pltpu.CompilerParams(
            # K/V scratch carries state across the query-tile axis -> arbitrary
            dimension_semantics=("parallel", "arbitrary"),
            vmem_limit_bytes=vmem_limit),
    )(x, x, params["ln1_g"], params["ln1_b"], wq, wk, wv, wproj,
      params["bproj"], params["ln2_g"], params["ln2_b"], w1, params["b1"],
      w2, params["b2"])


def reference_block(x, params, *, num_heads, head_dim, skip_lam=1.0, eps=1e-5):
    """Pure-jnp f32 reference mirroring the PyTorch Block forward (eval mode)."""
    def ln(v, g, b):
        mu = v.mean(-1, keepdims=True)
        var = ((v - mu) ** 2).mean(-1, keepdims=True)
        return (v - mu) / jnp.sqrt(var + eps) * g + b

    B, N, C = x.shape
    HD = num_heads * head_dim
    xn = ln(x, params["ln1_g"], params["ln1_b"])
    qkv = xn @ params["wqkv"]
    qkv = qkv.reshape(B, N, 3, num_heads, head_dim).transpose(2, 0, 3, 1, 4)
    q, k, v = qkv[0], qkv[1], qkv[2]
    attn = (q * head_dim ** (-0.5)) @ jnp.swapaxes(k, -2, -1)
    attn = jax.nn.softmax(attn, axis=-1)
    a = (attn @ v).transpose(0, 2, 1, 3).reshape(B, N, HD)
    a = a @ params["wproj"] + params["bproj"]
    x = x + a / skip_lam
    xn2 = ln(x, params["ln2_g"], params["ln2_b"])
    h1 = jax.nn.gelu(xn2 @ params["w1"] + params["b1"], approximate=False)
    h2 = h1 @ params["w2"] + params["b2"]
    return x + h2 / skip_lam


def init_params(key, dim, num_heads, head_dim, mlp_ratio):
    HD = num_heads * head_dim
    hidden = int(dim * mlp_ratio)
    ks = jax.random.split(key, 4)
    std = 0.02
    return {
        "ln1_g": jnp.ones((1, dim), jnp.float32),
        "ln1_b": jnp.zeros((1, dim), jnp.float32),
        "wqkv": std * jax.random.normal(ks[0], (dim, 3 * HD), jnp.float32),
        "wproj": std * jax.random.normal(ks[1], (HD, dim), jnp.float32),
        "bproj": jnp.zeros((1, dim), jnp.float32),
        "ln2_g": jnp.ones((1, dim), jnp.float32),
        "ln2_b": jnp.zeros((1, dim), jnp.float32),
        "w1": std * jax.random.normal(ks[2], (dim, hidden), jnp.float32),
        "b1": jnp.zeros((1, hidden), jnp.float32),
        "w2": std * jax.random.normal(ks[3], (hidden, dim), jnp.float32),
        "b2": jnp.zeros((1, dim), jnp.float32),
    }


if __name__ == "__main__":
    # Small but lane-dense shapes: C, HD, hidden are multiples of 128; the
    # sequence tile (8) is a multiple of 8 sublanes.
    B, N, dim = 2, 16, 128
    num_heads, mlp_ratio = 4, 4.0
    head_dim = dim // num_heads   # default head_dim in the PyTorch module

    key = jax.random.PRNGKey(0)
    kx, kp = jax.random.split(key)
    x = jax.random.normal(kx, (B, N, dim), jnp.float32)
    params = init_params(kp, dim, num_heads, head_dim, mlp_ratio)

    out = transformer_block(x, params, num_heads=num_heads, head_dim=head_dim,
                            q_tile=8)
    out = jax.block_until_ready(out)

    ref = reference_block(x, params, num_heads=num_heads, head_dim=head_dim)
    assert out.shape == (B, N, dim)
    # bf16 matmuls + approx reciprocal -> compare to the f32 reference with a
    # bf16-appropriate tolerance.
    err = float(jnp.max(jnp.abs(out - ref)))
    assert jnp.allclose(out, ref, atol=2e-2, rtol=2e-2), \
        f"mismatch vs reference (max abs err {err})"

    print("KERNEL_OK")
</pallas_src>

<mosaic_0001>
module attributes {stable_mosaic.version = 11 : i64} {
  func.func @block_kernel(%arg0: i32, %arg1: i32, %arg2: memref<1x8x128xf32, #tpu.memory_space<vmem>>, %arg3: memref<1x16x128xf32, #tpu.memory_space<vmem>>, %arg4: memref<1x128xf32, #tpu.memory_space<vmem>>, %arg5: memref<1x128xf32, #tpu.memory_space<vmem>>, %arg6: memref<128x128xbf16, #tpu.memory_space<vmem>>, %arg7: memref<128x128xbf16, #tpu.memory_space<vmem>>, %arg8: memref<128x128xbf16, #tpu.memory_space<vmem>>, %arg9: memref<128x128xbf16, #tpu.memory_space<vmem>>, %arg10: memref<1x128xf32, #tpu.memory_space<vmem>>, %arg11: memref<1x128xf32, #tpu.memory_space<vmem>>, %arg12: memref<1x128xf32, #tpu.memory_space<vmem>>, %arg13: memref<128x512xbf16, #tpu.memory_space<vmem>>, %arg14: memref<1x512xf32, #tpu.memory_space<vmem>>, %arg15: memref<512x128xbf16, #tpu.memory_space<vmem>>, %arg16: memref<1x128xf32, #tpu.memory_space<vmem>>, %arg17: memref<1x8x128xf32, #tpu.memory_space<vmem>>, %arg18: memref<4x16x32xbf16, #tpu.memory_space<vmem>>, %arg19: memref<4x16x32xbf16, #tpu.memory_space<vmem>>) attributes {dimension_semantics = [#tpu.dimension_semantics<parallel>, #tpu.dimension_semantics<arbitrary>], iteration_bounds = array<i64: 2, 2>, scalar_prefetch = 0 : i64, scratch_operands = 2 : i64, tpu.core_type = #tpu.core_type<tc>, window_params = [{transform_indices = @transform_0, window_bounds = array<i64: 1, 8, 128>}, {transform_indices = @transform_1, window_bounds = array<i64: 1, 16, 128>}, {pipeline_mode = #tpu.pipeline_mode<synchronous>, transform_indices = @transform_2, window_bounds = array<i64: 1, 128>}, {pipeline_mode = #tpu.pipeline_mode<synchronous>, transform_indices = @transform_3, window_bounds = array<i64: 1, 128>}, {pipeline_mode = #tpu.pipeline_mode<synchronous>, transform_indices = @transform_4, window_bounds = array<i64: 128, 128>}, {pipeline_mode = #tpu.pipeline_mode<synchronous>, transform_indices = @transform_5, window_bounds = array<i64: 128, 128>}, {pipeline_mode = #tpu.pipeline_mode<synchronous>, transform_indices = @transform_6, window_bounds = array<i64: 128, 128>}, {pipeline_mode = #tpu.pipeline_mode<synchronous>, transform_indices = @transform_7, window_bounds = array<i64: 128, 128>}, {pipeline_mode = #tpu.pipeline_mode<synchronous>, transform_indices = @transform_8, window_bounds = array<i64: 1, 128>}, {pipeline_mode = #tpu.pipeline_mode<synchronous>, transform_indices = @transform_9, window_bounds = array<i64: 1, 128>}, {pipeline_mode = #tpu.pipeline_mode<synchronous>, transform_indices = @transform_10, window_bounds = array<i64: 1, 128>}, {pipeline_mode = #tpu.pipeline_mode<synchronous>, transform_indices = @transform_11, window_bounds = array<i64: 128, 512>}, {pipeline_mode = #tpu.pipeline_mode<synchronous>, transform_indices = @transform_12, window_bounds = array<i64: 1, 512>}, {pipeline_mode = #tpu.pipeline_mode<synchronous>, transform_indices = @transform_13, window_bounds = array<i64: 512, 128>}, {pipeline_mode = #tpu.pipeline_mode<synchronous>, transform_indices = @transform_14, window_bounds = array<i64: 1, 128>}, {transform_indices = @transform_15, window_bounds = array<i64: 1, 8, 128>}]} {
    %c0_i32 = arith.constant 0 : i32
    %0 = arith.cmpi eq, %arg1, %c0_i32 : i32
    %1 = arith.extui %0 : i1 to i32
    %c0_i32_0 = arith.constant 0 : i32
    %2 = arith.cmpi ne, %1, %c0_i32_0 : i32
    scf.if %2 {
      %c0_56 = arith.constant 0 : index
      %c0_57 = arith.constant 0 : index
      %c0_58 = arith.constant 0 : index
      %111 = vector.load %arg3[%c0_56, %c0_57, %c0_58] : memref<1x16x128xf32, #tpu.memory_space<vmem>>, vector<1x16x128xf32>
      %112 = vector.shape_cast %111 : vector<1x16x128xf32> to vector<16x128xf32>
      %c0_59 = arith.constant 0 : index
      %c0_60 = arith.constant 0 : index
      %113 = vector.load %arg4[%c0_59, %c0_60] : memref<1x128xf32, #tpu.memory_space<vmem>>, vector<1x128xf32>
      %c0_61 = arith.constant 0 : index
      %c0_62 = arith.constant 0 : index
      %114 = vector.load %arg5[%c0_61, %c0_62] : memref<1x128xf32, #tpu.memory_space<vmem>>, vector<1x128xf32>
      %cst_63 = arith.constant dense<0.000000e+00> : vector<16xf32>
      %115 = vector.multi_reduction <add>, %112, %cst_63 [1] : vector<16x128xf32> to vector<16xf32>
      %116 = vector.shape_cast %115 : vector<16xf32> to vector<16x1xf32>
      %cst_64 = arith.constant 1.280000e+02 : f32
      %117 = vector.broadcast %cst_64 : f32 to vector<16x1xf32>
      %118 = arith.divf %116, %117 : vector<16x1xf32>
      %119 = vector.broadcast %118 : vector<16x1xf32> to vector<16x128xf32>
      %120 = arith.subf %112, %119 : vector<16x128xf32>
      %121 = arith.mulf %120, %120 : vector<16x128xf32>
      %cst_65 = arith.constant dense<0.000000e+00> : vector<16xf32>
      %122 = vector.multi_reduction <add>, %121, %cst_65 [1] : vector<16x128xf32> to vector<16xf32>
      %123 = vector.shape_cast %122 : vector<16xf32> to vector<16x1xf32>
      %cst_66 = arith.constant 1.280000e+02 : f32
      %124 = vector.broadcast %cst_66 : f32 to vector<16x1xf32>
      %125 = arith.divf %123, %124 : vector<16x1xf32>
      %126 = vector.broadcast %118 : vector<16x1xf32> to vector<16x128xf32>
      %127 = arith.subf %112, %126 : vector<16x128xf32>
      %cst_67 = arith.constant 9.99999974E-6 : f32
      %128 = vector.broadcast %cst_67 : f32 to vector<16x1xf32>
      %129 = arith.addf %125, %128 : vector<16x1xf32>
      %130 = math.rsqrt %129 : vector<16x1xf32>
      %131 = vector.broadcast %130 : vector<16x1xf32> to vector<16x128xf32>
      %132 = arith.mulf %127, %131 : vector<16x128xf32>
      %133 = vector.broadcast %113 : vector<1x128xf32> to vector<16x128xf32>
      %134 = arith.mulf %132, %133 : vector<16x128xf32>
      %135 = vector.broadcast %114 : vector<1x128xf32> to vector<16x128xf32>
      %136 = arith.addf %134, %135 : vector<16x128xf32>
      %137 = arith.truncf %136 : vector<16x128xf32> to vector<16x128xbf16>
      %c0_68 = arith.constant 0 : index
      %c0_69 = arith.constant 0 : index
      %138 = vector.load %arg7[%c0_68, %c0_69] : memref<128x128xbf16, #tpu.memory_space<vmem>>, vector<128x128xbf16>
      %cst_70 = arith.constant dense<0.000000e+00> : vector<16x128xf32>
      %139 = tpu.matmul %137, %138, %cst_70 {dimension_numbers = #tpu.dot_dimension_numbers<[1], [0], [0], [1], [0, 0, 1, 1], [], []>} : vector<16x128xbf16>, vector<128x128xbf16>, vector<16x128xf32> -> vector<16x128xf32>
      %c0_71 = arith.constant 0 : index
      %c0_72 = arith.constant 0 : index
      %140 = vector.load %arg8[%c0_71, %c0_72] : memref<128x128xbf16, #tpu.memory_space<vmem>>, vector<128x128xbf16>
      %cst_73 = arith.constant dense<0.000000e+00> : vector<16x128xf32>
      %141 = tpu.matmul %137, %140, %cst_73 {dimension_numbers = #tpu.dot_dimension_numbers<[1], [0], [0], [1], [0, 0, 1, 1], [], []>} : vector<16x128xbf16>, vector<128x128xbf16>, vector<16x128xf32> -> vector<16x128xf32>
      %142 = vector.shape_cast %139 : vector<16x128xf32> to vector<16x4x32xf32>
      %143 = tpu.transpose %142, [1, 0, 2] : vector<16x4x32xf32> -> vector<4x16x32xf32>
      %144 = arith.truncf %143 : vector<4x16x32xf32> to vector<4x16x32xbf16>
      %c0_74 = arith.constant 0 : index
      %c0_75 = arith.constant 0 : index
      %c0_76 = arith.constant 0 : index
      %145 = vector.load %arg18[%c0_74, %c0_75, %c0_76] : memref<4x16x32xbf16, #tpu.memory_space<vmem>>, vector<4x16x32xbf16>
      tpu.vector_store %arg18[%c0_74, %c0_75, %c0_76], %144 {strides = array<i32>} : memref<4x16x32xbf16, #tpu.memory_space<vmem>>, vector<4x16x32xbf16>,
      %146 = vector.shape_cast %141 : vector<16x128xf32> to vector<16x4x32xf32>
      %147 = tpu.transpose %146, [1, 0, 2] : vector<16x4x32xf32> -> vector<4x16x32xf32>
      %148 = arith.truncf %147 : vector<4x16x32xf32> to vector<4x16x32xbf16>
      %c0_77 = arith.constant 0 : index
      %c0_78 = arith.constant 0 : index
      %c0_79 = arith.constant 0 : index
      %149 = vector.load %arg19[%c0_77, %c0_78, %c0_79] : memref<4x16x32xbf16, #tpu.memory_space<vmem>>, vector<4x16x32xbf16>
      tpu.vector_store %arg19[%c0_77, %c0_78, %c0_79], %148 {strides = array<i32>} : memref<4x16x32xbf16, #tpu.memory_space<vmem>>, vector<4x16x32xbf16>,
    } else {
    }
    %c0 = arith.constant 0 : index
    %c0_1 = arith.constant 0 : index
    %c0_2 = arith.constant 0 : index
    %3 = vector.load %arg2[%c0, %c0_1, %c0_2] : memref<1x8x128xf32, #tpu.memory_space<vmem>>, vector<1x8x128xf32>
    %4 = vector.shape_cast %3 : vector<1x8x128xf32> to vector<8x128xf32>
    %c0_3 = arith.constant 0 : index
    %c0_4 = arith.constant 0 : index
    %5 = vector.load %arg4[%c0_3, %c0_4] : memref<1x128xf32, #tpu.memory_space<vmem>>, vector<1x128xf32>
    %c0_5 = arith.constant 0 : index
    %c0_6 = arith.constant 0 : index
    %6 = vector.load %arg5[%c0_5, %c0_6] : memref<1x128xf32, #tpu.memory_space<vmem>>, vector<1x128xf32>
    %cst = arith.constant dense<0.000000e+00> : vector<8xf32>
    %7 = vector.multi_reduction <add>, %4, %cst [1] : vector<8x128xf32> to vector<8xf32>
    %8 = vector.shape_cast %7 : vector<8xf32> to vector<8x1xf32>
    %cst_7 = arith.constant 1.280000e+02 : f32
    %9 = vector.broadcast %cst_7 : f32 to vector<8x1xf32>
    %10 = arith.divf %8, %9 : vector<8x1xf32>
    %11 = vector.broadcast %10 : vector<8x1xf32> to vector<8x128xf32>
    %12 = arith.subf %4, %11 : vector<8x128xf32>
    %13 = arith.mulf %12, %12 : vector<8x128xf32>
    %cst_8 = arith.constant dense<0.000000e+00> : vector<8xf32>
    %14 = vector.multi_reduction <add>, %13, %cst_8 [1] : vector<8x128xf32> to vector<8xf32>
    %15 = vector.shape_cast %14 : vector<8xf32> to vector<8x1xf32>
    %cst_9 = arith.constant 1.280000e+02 : f32
    %16 = vector.broadcast %cst_9 : f32 to vector<8x1xf32>
    %17 = arith.divf %15, %16 : vector<8x1xf32>
    %18 = vector.broadcast %10 : vector<8x1xf32> to vector<8x128xf32>
    %19 = arith.subf %4, %18 : vector<8x128xf32>
    %cst_10 = arith.constant 9.99999974E-6 : f32
    %20 = vector.broadcast %cst_10 : f32 to vector<8x1xf32>
    %21 = arith.addf %17, %20 : vector<8x1xf32>
    %22 = math.rsqrt %21 : vector<8x1xf32>
    %23 = vector.broadcast %22 : vector<8x1xf32> to vector<8x128xf32>
    %24 = arith.mulf %19, %23 : vector<8x128xf32>
    %25 = vector.broadcast %5 : vector<1x128xf32> to vector<8x128xf32>
    %26 = arith.mulf %24, %25 : vector<8x128xf32>
    %27 = vector.broadcast %6 : vector<1x128xf32> to vector<8x128xf32>
    %28 = arith.addf %26, %27 : vector<8x128xf32>
    %29 = arith.truncf %28 : vector<8x128xf32> to vector<8x128xbf16>
    %c0_11 = arith.constant 0 : index
    %c0_12 = arith.constant 0 : index
    %30 = vector.load %arg6[%c0_11, %c0_12] : memref<128x128xbf16, #tpu.memory_space<vmem>>, vector<128x128xbf16>
    %cst_13 = arith.constant dense<0.000000e+00> : vector<8x128xf32>
    %31 = tpu.matmul %29, %30, %cst_13 {dimension_numbers = #tpu.dot_dimension_numbers<[1], [0], [0], [1], [0, 0, 1, 1], [], []>} : vector<8x128xbf16>, vector<128x128xbf16>, vector<8x128xf32> -> vector<8x128xf32>
    %32 = arith.truncf %31 : vector<8x128xf32> to vector<8x128xbf16>
    %33 = vector.shape_cast %32 : vector<8x128xbf16> to vector<8x4x32xbf16>
    %34 = tpu.transpose %33, [1, 0, 2] : vector<8x4x32xbf16> -> vector<4x8x32xbf16>
    %c0_14 = arith.constant 0 : index
    %c0_15 = arith.constant 0 : index
    %c0_16 = arith.constant 0 : index
    %35 = vector.load %arg18[%c0_14, %c0_15, %c0_16] : memref<4x16x32xbf16, #tpu.memory_space<vmem>>, vector<4x16x32xbf16>
    %c0_17 = arith.constant 0 : index
    %c0_18 = arith.constant 0 : index
    %c0_19 = arith.constant 0 : index
    %36 = vector.load %arg19[%c0_17, %c0_18, %c0_19] : memref<4x16x32xbf16, #tpu.memory_space<vmem>>, vector<4x16x32xbf16>
    "tpu.trace_start"() <{level = 10 : i32, message = "hqd,hkd->hqk"}> : () -> ()
    %cst_20 = arith.constant dense<0.000000e+00> : vector<4x8x16xf32>
    %37 = tpu.matmul %34, %35, %cst_20 {dimension_numbers = #tpu.dot_dimension_numbers<[2], [2], [1], [1], [0, 0, 0, 1, 1, 1], [0], [0]>} : vector<4x8x32xbf16>, vector<4x16x32xbf16>, vector<4x8x16xf32> -> vector<4x8x16xf32>
    "tpu.trace_stop"() : () -> ()
    %cst_21 = arith.constant dense<0xFF800000> : vector<4x8xf32>
    %38 = vector.multi_reduction <maximumf>, %37, %cst_21 [2] : vector<4x8x16xf32> to vector<4x8xf32>
    %39 = vector.shape_cast %38 : vector<4x8xf32> to vector<4x8x1xf32>
    %40 = vector.broadcast %39 : vector<4x8x1xf32> to vector<4x8x16xf32>
    %41 = arith.subf %37, %40 : vector<4x8x16xf32>
    %42 = math.exp %41 : vector<4x8x16xf32>
    %cst_22 = arith.constant dense<0.000000e+00> : vector<4x8xf32>
    %43 = vector.multi_reduction <add>, %42, %cst_22 [2] : vector<4x8x16xf32> to vector<4x8xf32>
    %44 = vector.shape_cast %43 : vector<4x8xf32> to vector<4x8x1xf32>
    %45 = tpu.reciprocal %44 {approx = true} : vector<4x8x1xf32> -> vector<4x8x1xf32>
    %46 = vector.broadcast %45 : vector<4x8x1xf32> to vector<4x8x16xf32>
    %47 = arith.mulf %42, %46 : vector<4x8x16xf32>
    %48 = arith.truncf %47 : vector<4x8x16xf32> to vector<4x8x16xbf16>
    "tpu.trace_start"() <{level = 10 : i32, message = "hqk,hkd->hqd"}> : () -> ()
    %cst_23 = arith.constant dense<0.000000e+00> : vector<4x8x32xf32>
    %49 = tpu.matmul %48, %36, %cst_23 {dimension_numbers = #tpu.dot_dimension_numbers<[2], [1], [1], [2], [0, 0, 0, 1, 1, 2], [0], [0]>} : vector<4x8x16xbf16>, vector<4x16x32xbf16>, vector<4x8x32xf32> -> vector<4x8x32xf32>
    "tpu.trace_stop"() : () -> ()
    %50 = tpu.transpose %49, [1, 0, 2] : vector<4x8x32xf32> -> vector<8x4x32xf32>
    %51 = vector.shape_cast %50 : vector<8x4x32xf32> to vector<8x128xf32>
    %52 = arith.truncf %51 : vector<8x128xf32> to vector<8x128xbf16>
    %c0_24 = arith.constant 0 : index
    %c0_25 = arith.constant 0 : index
    %53 = vector.load %arg9[%c0_24, %c0_25] : memref<128x128xbf16, #tpu.memory_space<vmem>>, vector<128x128xbf16>
    %cst_26 = arith.constant dense<0.000000e+00> : vector<8x128xf32>
    %54 = tpu.matmul %52, %53, %cst_26 {dimension_numbers = #tpu.dot_dimension_numbers<[1], [0], [0], [1], [0, 0, 1, 1], [], []>} : vector<8x128xbf16>, vector<128x128xbf16>, vector<8x128xf32> -> vector<8x128xf32>
    %c0_27 = arith.constant 0 : index
    %c0_28 = arith.constant 0 : index
    %55 = vector.load %arg10[%c0_27, %c0_28] : memref<1x128xf32, #tpu.memory_space<vmem>>, vector<1x128xf32>
    %56 = vector.broadcast %55 : vector<1x128xf32> to vector<8x128xf32>
    %57 = arith.addf %54, %56 : vector<8x128xf32>
    %cst_29 = arith.constant 1.000000e+00 : f32
    %58 = vector.broadcast %cst_29 : f32 to vector<8x128xf32>
    %59 = arith.mulf %57, %58 : vector<8x128xf32>
    %60 = arith.addf %4, %59 : vector<8x128xf32>
    %c0_30 = arith.constant 0 : index
    %c0_31 = arith.constant 0 : index
    %61 = vector.load %arg11[%c0_30, %c0_31] : memref<1x128xf32, #tpu.memory_space<vmem>>, vector<1x128xf32>
    %c0_32 = arith.constant 0 : index
    %c0_33 = arith.constant 0 : index
    %62 = vector.load %arg12[%c0_32, %c0_33] : memref<1x128xf32, #tpu.memory_space<vmem>>, vector<1x128xf32>
    %cst_34 = arith.constant dense<0.000000e+00> : vector<8xf32>
    %63 = vector.multi_reduction <add>, %60, %cst_34 [1] : vector<8x128xf32> to vector<8xf32>
    %64 = vector.shape_cast %63 : vector<8xf32> to vector<8x1xf32>
    %cst_35 = arith.constant 1.280000e+02 : f32
    %65 = vector.broadcast %cst_35 : f32 to vector<8x1xf32>
    %66 = arith.divf %64, %65 : vector<8x1xf32>
    %67 = vector.broadcast %66 : vector<8x1xf32> to vector<8x128xf32>
    %68 = arith.subf %60, %67 : vector<8x128xf32>
    %69 = arith.mulf %68, %68 : vector<8x128xf32>
    %cst_36 = arith.constant dense<0.000000e+00> : vector<8xf32>
    %70 = vector.multi_reduction <add>, %69, %cst_36 [1] : vector<8x128xf32> to vector<8xf32>
    %71 = vector.shape_cast %70 : vector<8xf32> to vector<8x1xf32>
    %cst_37 = arith.constant 1.280000e+02 : f32
    %72 = vector.broadcast %cst_37 : f32 to vector<8x1xf32>
    %73 = arith.divf %71, %72 : vector<8x1xf32>
    %74 = vector.broadcast %66 : vector<8x1xf32> to vector<8x128xf32>
    %75 = arith.subf %60, %74 : vector<8x128xf32>
    %cst_38 = arith.constant 9.99999974E-6 : f32
    %76 = vector.broadcast %cst_38 : f32 to vector<8x1xf32>
    %77 = arith.addf %73, %76 : vector<8x1xf32>
    %78 = math.rsqrt %77 : vector<8x1xf32>
    %79 = vector.broadcast %78 : vector<8x1xf32> to vector<8x128xf32>
    %80 = arith.mulf %75, %79 : vector<8x128xf32>
    %81 = vector.broadcast %61 : vector<1x128xf32> to vector<8x128xf32>
    %82 = arith.mulf %80, %81 : vector<8x128xf32>
    %83 = vector.broadcast %62 : vector<1x128xf32> to vector<8x128xf32>
    %84 = arith.addf %82, %83 : vector<8x128xf32>
    %85 = arith.truncf %84 : vector<8x128xf32> to vector<8x128xbf16>
    %c0_39 = arith.constant 0 : index
    %c0_40 = arith.constant 0 : index
    %86 = vector.load %arg13[%c0_39, %c0_40] : memref<128x512xbf16, #tpu.memory_space<vmem>>, vector<128x512xbf16>
    %cst_41 = arith.constant dense<0.000000e+00> : vector<8x512xf32>
    %87 = tpu.matmul %85, %86, %cst_41 {dimension_numbers = #tpu.dot_dimension_numbers<[1], [0], [0], [1], [0, 0, 1, 1], [], []>} : vector<8x128xbf16>, vector<128x512xbf16>, vector<8x512xf32> -> vector<8x512xf32>
    %c0_42 = arith.constant 0 : index
    %c0_43 = arith.constant 0 : index
    %88 = vector.load %arg14[%c0_42, %c0_43] : memref<1x512xf32, #tpu.memory_space<vmem>>, vector<1x512xf32>
    %89 = vector.broadcast %88 : vector<1x512xf32> to vector<8x512xf32>
    %90 = arith.addf %87, %89 : vector<8x512xf32>
    %cst_44 = arith.constant 5.000000e-01 : f32
    %91 = vector.broadcast %cst_44 : f32 to vector<8x512xf32>
    %92 = arith.mulf %91, %90 : vector<8x512xf32>
    %cst_45 = arith.constant 0.707106769 : f32
    %93 = vector.broadcast %cst_45 : f32 to vector<8x512xf32>
    %94 = arith.mulf %90, %93 : vector<8x512xf32>
    %95 = math.erf %94 : vector<8x512xf32>
    %cst_46 = arith.constant 1.000000e+00 : f32
    %96 = vector.broadcast %cst_46 : f32 to vector<8x512xf32>
    %97 = arith.addf %96, %95 : vector<8x512xf32>
    %98 = arith.mulf %92, %97 : vector<8x512xf32>
    %99 = arith.truncf %98 : vector<8x512xf32> to vector<8x512xbf16>
    %c0_47 = arith.constant 0 : index
    %c0_48 = arith.constant 0 : index
    %100 = vector.load %arg15[%c0_47, %c0_48] : memref<512x128xbf16, #tpu.memory_space<vmem>>, vector<512x128xbf16>
    %cst_49 = arith.constant dense<0.000000e+00> : vector<8x128xf32>
    %101 = tpu.matmul %99, %100, %cst_49 {dimension_numbers = #tpu.dot_dimension_numbers<[1], [0], [0], [1], [0, 0, 1, 1], [], []>} : vector<8x512xbf16>, vector<512x128xbf16>, vector<8x128xf32> -> vector<8x128xf32>
    %c0_50 = arith.constant 0 : index
    %c0_51 = arith.constant 0 : index
    %102 = vector.load %arg16[%c0_50, %c0_51] : memref<1x128xf32, #tpu.memory_space<vmem>>, vector<1x128xf32>
    %103 = vector.broadcast %102 : vector<1x128xf32> to vector<8x128xf32>
    %104 = arith.addf %101, %103 : vector<8x128xf32>
    %cst_52 = arith.constant 1.000000e+00 : f32
    %105 = vector.broadcast %cst_52 : f32 to vector<8x128xf32>
    %106 = arith.mulf %104, %105 : vector<8x128xf32>
    %107 = arith.addf %60, %106 : vector<8x128xf32>
    %c0_53 = arith.constant 0 : index
    %c0_54 = arith.constant 0 : index
    %c0_55 = arith.constant 0 : index
    %108 = vector.load %arg17[%c0_53, %c0_54, %c0_55] : memref<1x8x128xf32, #tpu.memory_space<vmem>>, vector<1x8x128xf32>
    %109 = vector.shape_cast %108 : vector<1x8x128xf32> to vector<8x128xf32>
    %110 = vector.shape_cast %107 : vector<8x128xf32> to vector<1x8x128xf32>
    tpu.vector_store %arg17[%c0_53, %c0_54, %c0_55], %110 {strides = array<i32>} : memref<1x8x128xf32, #tpu.memory_space<vmem>>, vector<1x8x128xf32>,
    return
  }
  func.func @transform_0(%arg0: i32, %arg1: i32) -> (i32, i32, i32) {
    %c0_i32 = arith.constant 0 : i32
    %c0_i32_0 = arith.constant 0 : i32
    return %arg0, %arg1, %c0_i32 : i32, i32, i32
  }
  func.func @transform_1(%arg0: i32, %arg1: i32) -> (i32, i32, i32) {
    %c0_i32 = arith.constant 0 : i32
    %c0_i32_0 = arith.constant 0 : i32
    %c0_i32_1 = arith.constant 0 : i32
    return %arg0, %c0_i32, %c0_i32_0 : i32, i32, i32
  }
  func.func @transform_2(%arg0: i32, %arg1: i32) -> (i32, i32) {
    %c0_i32 = arith.constant 0 : i32
    %c0_i32_0 = arith.constant 0 : i32
    %c0_i32_1 = arith.constant 0 : i32
    return %c0_i32, %c0_i32_0 : i32, i32
  }
  func.func @transform_3(%arg0: i32, %arg1: i32) -> (i32, i32) {
    %c0_i32 = arith.constant 0 : i32
    %c0_i32_0 = arith.constant 0 : i32
    %c0_i32_1 = arith.constant 0 : i32
    return %c0_i32, %c0_i32_0 : i32, i32
  }
  func.func @transform_4(%arg0: i32, %arg1: i32) -> (i32, i32) {
    %c0_i32 = arith.constant 0 : i32
    %c0_i32_0 = arith.constant 0 : i32
    %c0_i32_1 = arith.constant 0 : i32
    return %c0_i32, %c0_i32_0 : i32, i32
  }
  func.func @transform_5(%arg0: i32, %arg1: i32) -> (i32, i32) {
    %c0_i32 = arith.constant 0 : i32
    %c0_i32_0 = arith.constant 0 : i32
    %c0_i32_1 = arith.constant 0 : i32
    return %c0_i32, %c0_i32_0 : i32, i32
  }
  func.func @transform_6(%arg0: i32, %arg1: i32) -> (i32, i32) {
    %c0_i32 = arith.constant 0 : i32
    %c0_i32_0 = arith.constant 0 : i32
    %c0_i32_1 = arith.constant 0 : i32
    return %c0_i32, %c0_i32_0 : i32, i32
  }
  func.func @transform_7(%arg0: i32, %arg1: i32) -> (i32, i32) {
    %c0_i32 = arith.constant 0 : i32
    %c0_i32_0 = arith.constant 0 : i32
    %c0_i32_1 = arith.constant 0 : i32
    return %c0_i32, %c0_i32_0 : i32, i32
  }
  func.func @transform_8(%arg0: i32, %arg1: i32) -> (i32, i32) {
    %c0_i32 = arith.constant 0 : i32
    %c0_i32_0 = arith.constant 0 : i32
    %c0_i32_1 = arith.constant 0 : i32
    return %c0_i32, %c0_i32_0 : i32, i32
  }
  func.func @transform_9(%arg0: i32, %arg1: i32) -> (i32, i32) {
    %c0_i32 = arith.constant 0 : i32
    %c0_i32_0 = arith.constant 0 : i32
    %c0_i32_1 = arith.constant 0 : i32
    return %c0_i32, %c0_i32_0 : i32, i32
  }
  func.func @transform_10(%arg0: i32, %arg1: i32) -> (i32, i32) {
    %c0_i32 = arith.constant 0 : i32
    %c0_i32_0 = arith.constant 0 : i32
    %c0_i32_1 = arith.constant 0 : i32
    return %c0_i32, %c0_i32_0 : i32, i32
  }
  func.func @transform_11(%arg0: i32, %arg1: i32) -> (i32, i32) {
    %c0_i32 = arith.constant 0 : i32
    %c0_i32_0 = arith.constant 0 : i32
    %c0_i32_1 = arith.constant 0 : i32
    return %c0_i32, %c0_i32_0 : i32, i32
  }
  func.func @transform_12(%arg0: i32, %arg1: i32) -> (i32, i32) {
    %c0_i32 = arith.constant 0 : i32
    %c0_i32_0 = arith.constant 0 : i32
    %c0_i32_1 = arith.constant 0 : i32
    return %c0_i32, %c0_i32_0 : i32, i32
  }
  func.func @transform_13(%arg0: i32, %arg1: i32) -> (i32, i32) {
    %c0_i32 = arith.constant 0 : i32
    %c0_i32_0 = arith.constant 0 : i32
    %c0_i32_1 = arith.constant 0 : i32
    return %c0_i32, %c0_i32_0 : i32, i32
  }
  func.func @transform_14(%arg0: i32, %arg1: i32) -> (i32, i32) {
    %c0_i32 = arith.constant 0 : i32
    %c0_i32_0 = arith.constant 0 : i32
    %c0_i32_1 = arith.constant 0 : i32
    return %c0_i32, %c0_i32_0 : i32, i32
  }
  func.func @transform_15(%arg0: i32, %arg1: i32) -> (i32, i32, i32) {
    %c0_i32 = arith.constant 0 : i32
    %c0_i32_0 = arith.constant 0 : i32
    return %arg0, %arg1, %c0_i32 : i32, i32, i32
  }
}

</mosaic_0001>

<bundles_post_ra>
// kernel: tpu_custom_call.1
= control target key start
LH: loop header
LB: loop body
LE: loop exit
PB: predicated region body
PF: predicated region fallthrough
CT: control target
= control target key end

     0   :  { %s5318_s0 = inlined_call_operand.hbm [shape: f32[2,16,128], index: 0, kind: input, shape index: {}]   ;;  %s5319_s1 = inlined_call_operand.hbm [shape: f32[2,16,128], index: 1, kind: input, shape index: {}]   ;;  %s5320_s2 = inlined_call_operand.vmem [shape: f32[1,128], index: 2, kind: input, shape index: {}]   ;;  %s5321_s3 = inlined_call_operand.vmem [shape: f32[1,128], index: 3, kind: input, shape index: {}]   ;;  %s5322_s4 = inlined_call_operand.hbm [shape: bf16[128,128], index: 4, kind: input, shape index: {}]   ;;  %s5323_s5 = inlined_call_operand.hbm [shape: bf16[128,128], index: 5, kind: input, shape index: {}]   ;;  %s5324_s6 = inlined_call_operand.hbm [shape: bf16[128,128], index: 6, kind: input, shape index: {}]   ;;  %s5325_s7 = inlined_call_operand.hbm [shape: bf16[128,128], index: 7, kind: input, shape index: {}]   ;;  %s5326_s8 = inlined_call_operand.vmem [shape: f32[1,128], index: 8, kind: input, shape index: {}]   ;;  %s5327_s9 = inlined_call_operand.vmem [shape: f32[1,128], index: 9, kind: input, shape index: {}]   ;;  %s5328_s10 = inlined_call_operand.vmem [shape: f32[1,128], index: 10, kind: input, shape index: {}]   ;;  %s5329_s11 = inlined_call_operand.hbm [shape: bf16[128,512], index: 11, kind: input, shape index: {}]   ;;  %s5330_s12 = inlined_call_operand.vmem [shape: f32[1,512], index: 12, kind: input, shape index: {}]   ;;  %s5331_s13 = inlined_call_operand.hbm [shape: bf16[512,128], index: 13, kind: input, shape index: {}]   ;;  %s5332_s14 = inlined_call_operand.vmem [shape: f32[1,128], index: 14, kind: input, shape index: {}]   ;;  %s5333_s15 = inlined_call_operand.hbm [shape: f32[2,16,128], index: 15, kind: output, shape index: {}]  }
   0x1   :  { %5346 = sst [smem:[#allocation31_spill]] %s5318_s0 }
   0x2   :  { %5347 = sst [smem:[#allocation32_spill]] %s5319_s1 }
   0x3   :  { %5348 = sst [smem:[#allocation33_spill]] %s5320_s2 }
   0x4   :  { %5349 = sst [smem:[#allocation34_spill]] %s5321_s3 }
   0x5   :  { %5350 = sst [smem:[#allocation35_spill]] %s5322_s4 }
   0x6   :  { %5351 = sst [smem:[#allocation36_spill]] %s5323_s5 }
   0x7   :  { %5352 = sst [smem:[#allocation37_spill]] %s5324_s6 }
   0x8   :  { %5353 = sst [smem:[#allocation38_spill]] %s5325_s7 }
   0x9   :  { %5354 = sst [smem:[#allocation39_spill]] %s5326_s8 }
   0xa   :  { %5355 = sst [smem:[#allocation40_spill]] %s5327_s9 }
   0xb   :  { %5356 = sst [smem:[#allocation41_spill]] %s5328_s10 }
   0xc   :  { %5357 = sst [smem:[#allocation42_spill]] %s5329_s11 }
   0xd   :  { %5358 = sst [smem:[#allocation43_spill]] %s5330_s12 }
   0xe   :  { %5359 = sst [smem:[#allocation44_spill]] %s5331_s13 }
   0xf   :  { %5360 = sst [smem:[#allocation45_spill]] %s5332_s14 }
  0x10   :  { %5361 = sst [smem:[#allocation46_spill]] %s5333_s15 }
  0x11   :  { %20 = vsyncpa [#allocation5], 0 }
  0x12   :  { %22 = vsyncpa [#allocation5 + $0x1], 0 }
  0x13   :  { %23 = vsyncpa [#allocation8], 0 }
  0x14   :  { %25 = vsyncpa [#allocation8 + $0x1], 0 }
  0x15   :  { %26 = vsyncpa [#allocation11], 0 }
  0x16   :  { %27 = vsyncpa [#allocation14], 0 }
  0x17   :  { %28 = vsyncpa [#allocation17], 0 }
  0x18   :  { %29 = vsyncpa [#allocation6], 0 }
  0x19   :  { %31 = vsyncpa [#allocation6 + $0x1], 0  ;;  %s4566_s18 = smov 0   ;;  %s4568_s19 = smov 0  }
  0x1a   :  { %s4570_s20 = smov 0   ;;  %s4572_s21 = smov 0  }
  0x1b   :  { %s4574_s22 = smov 0   ;;  %s4576_s23 = smov 0  }
  0x1c   :  { %s4578_s24 = smov 0   ;;  %s4580_s25 = smov 0  }
  0x1d   :  { %s4582_s26 = smov 0   ;;  %s4584_s27 = smov 0  }
  0x1e   :  { %s4586_s28 = smov 0  }
  0x1f LB: > { %5362 = sst [smem:[#allocation26_spill]] %s4414_s18  ;;  %s4622_s29 = sadd.s32 4294967295, %s4454_s28   ;;  %s4454_s28 = sphi %s4586_s28, %s37_s28   ;;  %s4450_s27 = sphi %s4584_s27, %s5428_s27   ;;  %s4446_s26 = sphi %s4582_s26, %s5427_s26   ;;  %s4442_s25 = sphi %s4580_s25, %s5426_s25   ;;  %s4438_s24 = sphi %s4578_s24, %s5425_s24   ;;  %s4434_s23 = sphi %s4576_s23, %s5424_s23   ;;  %s4430_s22 = sphi %s4574_s22, %s5423_s22   ;;  %s4426_s21 = sphi %s4572_s21, %s5422_s21   ;;  %s4422_s20 = sphi %s4570_s20, %s5421_s20   ;;  %s4418_s19 = sphi %s4568_s19, %s5420_s19   ;;  %s4414_s18 = sphi %s4566_s18, %s5419_s18  }
  0x20   : > { %5363 = sst [smem:[#allocation27_spill]] %s4438_s24  ;;  %p3374_p0 = scmp.ge.s32.totalorder %s4454_s28, 1 }
  0x21   : > { %5364 = sst [smem:[#allocation28_spill]] %s4442_s25  ;;  %p5338_p1 = scmp.eq.s32.totalorder %s4622_s29, 0 }
  0x22   : > { %p409_p2 = scmp.lt.s32.totalorder %s4454_s28, 5  ;;  %s4456_s16 = smov [#allocation9]  }
  0x23   : > { %s427_s17 = sshll.u32 %s4456_s16, 4  ;;  %s4457_s14 = smov [#allocation10]   ;;  %s4631_s17 = int_to_ptr.vmem [resolvable:$true] %s427_s17 }
  0x24   : > { %p4627_p3 = pnand %p3374_p0, %p409_p2  ;;  %s440_s25 = sshll.u32 %s4457_s14, 4  ;;  %s4641_s25 = int_to_ptr.vmem [resolvable:$true] %s440_s25 }
  0x25   : > { %s4458_s12 = smov [#allocation13]   ;;  %s5368_s4 = sld [smem:[#allocation35_spill]] }
  0x26   : > { %s5365_s30 = scalar_select %p4627_p3, 1, 0 }
  0x27   : > { %p3781_p4 = pneg %p4627_p3  ;;  %s4643_s10 = sshll.u32 %s4458_s12, 4  ;;  %s467_s10 = int_to_ptr.vmem [resolvable:$true] %s4643_s10 }
  0x28   : > { %5366 = sst [smem:[#allocation29_spill]] %s5365_s30 }
  0x29   : > { %p4637_p5 = pnand %p3781_p4, %p5338_p1 }
  0x2b   : > { %s4084_s16 = scalar_lea.hbm %s5368_s4, 1024  ;;  %p4653_p7 = pneg %p4637_p5 }
  0x2c   : > { %p4085_p6 = scmp.ne.s32.totalorder %s5368_s4, %s4084_s16  ;;  %p4091_p10 = scmp.lt.u32.totalorder %s4084_s16, %s5368_s4 }
  0x2e   : > { %p4087_p8 = pnand %p4653_p7, %p4085_p6 }
  0x30   : > { %p4088_p9 = pneg %p4087_p8 }
  0x32   : > { %p4093_p11 = pnand %p4091_p10, %p4088_p9 }
  0x34   : > { %4096 = shalt.err (!%p4093_p11)
}
  0x35   : > { %s4097_s2 = scalar_lea.vmem %s4631_s17, 1024  ;;  %p4105_p2 = scmp.lt.s32.totalorder %s4631_s17, %s4631_s17 }
  0x36   : > { %p4098_p12 = scmp.ne.s32.totalorder %s4631_s17, %s4097_s2  ;;  %p4106_p4 = scmp.lt.s32.totalorder %s4097_s2, %s4097_s2 }
  0x38   : > { %p4100_p13 = pnand %p4098_p12, %p4653_p7  ;;  %p4107_p6 = por %p4106_p4, %p4105_p2 }
  0x3a   : > { %p4101_p0 = pneg %p4100_p13 }
  0x3c   : > { %p4108_p8 = pnand %p4107_p6, %p4101_p0 }
  0x3e   : > { %4111 = shalt.err (!%p4108_p8)
}
  0x3f   : > { %s5340_s3 = smov 64   ;;  %s4460_s8 = smov 4  }
  0x40   : > { %3784 = dma.hbm_to_vmem [thread:$0]  (!%p4637_p5), %s5368_s4, 1024, %s4631_s17, [#allocation8], %s5340_s3, %s5340_s3, %s4460_s8  }
  0x41   : > { %s5370_s5 = sld [smem:[#allocation36_spill]] }
  0x47   : > { %s4112_s2 = scalar_lea.hbm %s5370_s5, 1024 }
  0x48   : > { %p4113_p9 = scmp.ne.s32.totalorder %s5370_s5, %s4112_s2  ;;  %p4119_p12 = scmp.lt.u32.totalorder %s4112_s2, %s5370_s5 }
  0x4a   : > { %p4115_p10 = pnand %p4113_p9, %p4653_p7 }
  0x4c   : > { %p4116_p11 = pneg %p4115_p10 }
  0x4e   : > { %p4121_p13 = pnand %p4119_p12, %p4116_p11 }
  0x50   : > { %4124 = shalt.err (!%p4121_p13)
}
  0x51   : > { %s4125_s17 = scalar_lea.vmem %s4641_s25, 1024  ;;  %p4133_p6 = scmp.lt.s32.totalorder %s4641_s25, %s4641_s25 }
  0x52   : > { %p4126_p0 = scmp.ne.s32.totalorder %s4641_s25, %s4125_s17  ;;  %p4134_p8 = scmp.lt.s32.totalorder %s4125_s17, %s4125_s17 }
  0x54   : > { %p4128_p2 = pnand %p4126_p0, %p4653_p7  ;;  %p4135_p9 = por %p4134_p8, %p4133_p6 }
  0x56   : > { %p4129_p4 = pneg %p4128_p2 }
  0x58   : > { %p4136_p10 = pnand %p4135_p9, %p4129_p4 }
  0x5a   : > { %4139 = shalt.err (!%p4136_p10)
}
  0x5b   : > { %3787 = dma.hbm_to_vmem [thread:$0]  (!%p4637_p5), %s5370_s5, 1024, %s4641_s25, [#allocation11], %s5340_s3, %s5340_s3, %s4460_s8  }
  0x5c   : > { %s5371_s7 = sld [smem:[#allocation38_spill]] }
  0x62   : > { %s4140_s9 = scalar_lea.hbm %s5371_s7, 1024 }
  0x63   : > { %p4141_p11 = scmp.ne.s32.totalorder %s5371_s7, %s4140_s9  ;;  %p4147_p0 = scmp.lt.u32.totalorder %s4140_s9, %s5371_s7 }
  0x65   : > { %p4143_p12 = pnand %p4141_p11, %p4653_p7 }
  0x67   : > { %p4144_p13 = pneg %p4143_p12 }
  0x69   : > { %p4149_p2 = pnand %p4147_p0, %p4144_p13 }
  0x6b   : > { %4152 = shalt.err (!%p4149_p2)
}
  0x6c   : > { %s4153_s17 = scalar_lea.vmem %s467_s10, 1024  ;;  %p4161_p9 = scmp.lt.s32.totalorder %s467_s10, %s467_s10 }
  0x6d   : > { %p4154_p4 = scmp.ne.s32.totalorder %s467_s10, %s4153_s17  ;;  %p4162_p10 = scmp.lt.s32.totalorder %s4153_s17, %s4153_s17 }
  0x6f   : > { %p4156_p6 = pnand %p4154_p4, %p4653_p7  ;;  %p4163_p1 = por %p4162_p10, %p4161_p9 }
  0x71   : > { %p4157_p8 = pneg %p4156_p6 }
  0x73   : > { %p4164_p3 = pnand %p4163_p1, %p4157_p8 }
  0x75   : > { %4167 = shalt.err (!%p4164_p3)
}
  0x76   : > { %3793 = dma.hbm_to_vmem [thread:$0]  (!%p4637_p5), %s5371_s7, 1024, %s467_s10, [#allocation14], %s5340_s3, %s5340_s3, %s4460_s8  }
  0x77   : > { %s4461_s1 = smov [#allocation12]   ;;  %s4462_s30 = smov [#allocation15]  }
  0x78   : > { %s453_s18 = sshll.u32 %s4461_s1, 4  ;;  %s488_s9 = sshll.u32 %s4462_s30, 4  ;;  %s454_s18 = int_to_ptr.vmem [resolvable:$true] %s453_s18  ;;  %s489_s9 = int_to_ptr.vmem [resolvable:$true] %s488_s9 }
  0x79   : > { %s5372_s6 = sld [smem:[#allocation37_spill]] }
  0x7f   : > { %s4168_s12 = scalar_lea.hbm %s5372_s6, 1024 }
  0x80   : > { %p4169_p1 = scmp.ne.s32.totalorder %s5372_s6, %s4168_s12  ;;  %p4175_p12 = scmp.lt.u32.totalorder %s4168_s12, %s5372_s6 }
  0x82   : > { %p4171_p3 = pnand %p4169_p1, %p4653_p7 }
  0x84   : > { %p4172_p11 = pneg %p4171_p3 }
  0x86   : > { %p4177_p13 = pnand %p4175_p12, %p4172_p11 }
  0x88   : > { %4180 = shalt.err (!%p4177_p13)
}
  0x89   : > { %s4181_s10 = scalar_lea.vmem %s454_s18, 1024  ;;  %p4189_p6 = scmp.lt.s32.totalorder %s454_s18, %s454_s18 }
  0x8a   : > { %p4182_p0 = scmp.ne.s32.totalorder %s454_s18, %s4181_s10  ;;  %p4190_p8 = scmp.lt.s32.totalorder %s4181_s10, %s4181_s10 }
  0x8c   : > { %p4184_p2 = pnand %p4182_p0, %p4653_p7  ;;  %p4191_p9 = por %p4190_p8, %p4189_p6 }
  0x8e   : > { %p4185_p4 = pneg %p4184_p2 }
  0x90   : > { %p4192_p10 = pnand %p4191_p9, %p4185_p4 }
  0x92   : > { %4195 = shalt.err (!%p4192_p10)
}
  0x93   : > { %3790 = dma.hbm_to_vmem [thread:$0]  (!%p4637_p5), %s5372_s6, 1024, %s454_s18, [#allocation11], %s5340_s3, %s5340_s3, %s4460_s8  }
  0x94   : > { %s5373_s11 = sld [smem:[#allocation42_spill]] }
  0x9a   : > { %s4196_s16 = scalar_lea.hbm %s5373_s11, 4096 }
  0x9b   : > { %p4197_p1 = scmp.ne.s32.totalorder %s5373_s11, %s4196_s16  ;;  %p4203_p12 = scmp.lt.u32.totalorder %s4196_s16, %s5373_s11 }
  0x9d   : > { %p4199_p3 = pnand %p4197_p1, %p4653_p7 }
  0x9f   : > { %p4200_p11 = pneg %p4199_p3 }
  0xa1   : > { %p4205_p13 = pnand %p4203_p12, %p4200_p11 }
  0xa3   : > { %4208 = shalt.err (!%p4205_p13)
}
  0xa4   : > { %s4209_s25 = scalar_lea.vmem %s489_s9, 4096  ;;  %p4217_p6 = scmp.lt.s32.totalorder %s489_s9, %s489_s9 }
  0xa5   : > { %p4210_p0 = scmp.ne.s32.totalorder %s489_s9, %s4209_s25  ;;  %p4218_p8 = scmp.lt.s32.totalorder %s4209_s25, %s4209_s25 }
  0xa7   : > { %p4212_p2 = pnand %p4210_p0, %p4653_p7  ;;  %p4219_p9 = por %p4218_p8, %p4217_p6 }
  0xa9   : > { %p4213_p4 = pneg %p4212_p2 }
  0xab   : > { %p4220_p10 = pnand %p4219_p9, %p4213_p4 }
  0xad   : > { %4223 = shalt.err (!%p4220_p10)
}
  0xae   : > { %s4463_s18 = smov 256   ;;  %s4464_s10 = smov 16  }
  0xaf   : > { %3796 = dma.hbm_to_vmem [thread:$0]  (!%p4637_p5), %s5373_s11, 4096, %s489_s9, [#allocation14], %s4463_s18, %s4463_s18, %s4464_s10  }
  0xb0   : > { %s4465_s1 = smov [#allocation16]   ;;  %s5374_s13 = sld [smem:[#allocation44_spill]] }
  0xb1   : > { %s504_s30 = sshll.u32 %s4465_s1, 4  ;;  %s505_s30 = int_to_ptr.vmem [resolvable:$true] %s504_s30 }
  0xb6   : > { %s4224_s12 = scalar_lea.hbm %s5374_s13, 4096 }
  0xb7   : > { %p4225_p1 = scmp.ne.s32.totalorder %s5374_s13, %s4224_s12  ;;  %p4231_p12 = scmp.lt.u32.totalorder %s4224_s12, %s5374_s13 }
  0xb9   : > { %p4227_p3 = pnand %p4225_p1, %p4653_p7 }
  0xbb   : > { %p4228_p11 = pneg %p4227_p3 }
  0xbd   : > { %p4233_p13 = pnand %p4231_p12, %p4228_p11 }
  0xbf   : > { %4236 = shalt.err (!%p4233_p13)
}
  0xc0   : > { %s4237_s9 = scalar_lea.vmem %s505_s30, 4096  ;;  %p4245_p6 = scmp.lt.s32.totalorder %s505_s30, %s505_s30 }
  0xc1   : > { %p4238_p0 = scmp.ne.s32.totalorder %s505_s30, %s4237_s9  ;;  %p4246_p8 = scmp.lt.s32.totalorder %s4237_s9, %s4237_s9 }
  0xc3   : > { %p4240_p2 = pnand %p4238_p0, %p4653_p7  ;;  %p4247_p9 = por %p4246_p8, %p4245_p6 }
  0xc5   : > { %p4241_p4 = pneg %p4240_p2 }
  0xc7   : > { %p4248_p10 = pnand %p4247_p9, %p4241_p4 }
  0xc9   : > { %4251 = shalt.err (!%p4248_p10)
}
  0xca   : > { %s5375_s18 = smov 64   ;;  %s3373_s15 = sadd.s32 4294967294, %s4454_s28  }
  0xcb   : > { %3799 = dma.hbm_to_vmem [thread:$0]  (!%p4637_p5), %s5374_s13, 4096, %s505_s30, [#allocation17], %s5375_s18, %s5375_s18, %s4460_s8  }
  0xcc   : > { %s46_s24 = sadd.s32 1, %s4446_s26  ;;  %s5376_s4 = sld [smem:[#allocation26_spill]] }
  0xcd   : > { %p47_p7 = scmp.ge.s32.totalorder %s46_s24, 2  ;;  %s49_s0 = sadd.s32 1, %s4450_s27 }
  0xce   : > { %s58_s1 = sadd.s32 1, %s4434_s23  ;;  %p65_p1 = scmp.ne.s32.totalorder %s4434_s23, %s4430_s22 }
  0xcf   : > { %s5430_s24 = smov (%p47_p7, %s46_s24), 0  ;;  %s5432_s0 = smov (!%p47_p7, %s49_s0), %s4450_s27 }
  0xd0   : > { %s54_s8 = ssub.s32 %s4446_s26, %s5430_s24  ;;  %p66_p5 = scmp.eq.s32.totalorder %s4454_s28, 0 }
  0xd1   : > { %p51_p3 = scmp.ge.s32.totalorder %s5432_s0, 2  ;;  %p71_p11 = scmp.ne.s32.totalorder %s4430_s22, %s4426_s21 }
  0xd2   : > { %p4804_p12 = por %p66_p5, %p65_p1  ;;  %s84_s16 = sadd.s32 1, %s4422_s20 }
  0xd3   : > { %s5434_s0 = smov (%p51_p3, %s5432_s0), 0  ;;  %p5379_p13 = scmp.eq.s32.totalorder %s4622_s29, 0 }
  0xd4   : > { %5378 = sst [smem:[#allocation30_spill]] %s5434_s0  ;;  %p91_p2 = scmp.ne.s32.totalorder %s4422_s20, %s4418_s19 }
  0xd5   : > { %p4816_p0 = por %p5379_p13, %p71_p11  ;;  %s53_s12 = ssub.s32 %s4450_s27, %s5434_s0 }
  0xd6   : > { %p97_p4 = scmp.ne.s32.totalorder %s4418_s19, %s5376_s4  ;;  %s55_s2 = sor.u32 %s54_s8, %s53_s12 }
  0xd7   : > { %s5380_s14 = scalar_select %p4816_p0, 1, 0 }
  0xd8   : > { %p82_p6 = scmp.eq.s32.totalorder %s53_s12, 0  ;;  %p56_p8 = scmp.eq.s32.totalorder %s55_s2, 0 }
  0xd9   : > { %p4828_p9 = por %p91_p2, %p66_p5  ;;  %p5382_p10 = pmov %p5379_p13 }
  0xda   : > { %s4833_s25 = scalar_select %p82_p6, %s4422_s20, %s84_s16  }
  0xdb   : > { %s4836_s9 = scalar_select %p56_p8, %s4434_s23, %s58_s1  }
  0xdc   : > { %p4840_p7 = por %p97_p4, %p5382_p10  ;;  %p396_p3 = scmp.eq.s32.totalorder %s4622_s29, 3 }
  0xdd   : > { %p402_p13 = scmp.eq.s32.totalorder %s3373_s15, 3  ;;  %p3817_p5 = scmp.lt.s32.totalorder %s4454_s28, 4 }
  0xde   : > { %s5383_s18 = scalar_select %p4840_p7, 1, 0 }
  0xdf   : > { %p4849_p2 = por %p396_p3, %p65_p1  ;;  %s521_s10 = sand.u32 1, %s4434_s23  }
  0xe0   : > { %p4857_p6 = por %p402_p13, %p71_p11  ;;  %s3382_s1 = sshll.u32 %s521_s10, 3 }
  0xe1   : > { %s5384_s3 = scalar_select %p4849_p2, 1, 0 }
  0xe2   : > { %s5385_s4 = scalar_select %p4857_p6, 1, 0 }
  0xe3   : > { %s3383_s8 = sshll.u32 %s4450_s27, 1  ;;  %s525_s2 = scalar_lea.vmem [#allocation4], %s3382_s1 }
  0xe4   : > { %s530_s16 = sadd.s32 %s4446_s26, %s3383_s8  ;;  %s534_s5 = sshll.u32 %s525_s2, 4  ;;  %s4868_s5 = int_to_ptr.vmem [resolvable:$true] %s534_s5 }
  0xe5   : > { %s3384_s12 = sshll.u32 %s530_s16, 7  ;;  %s5386_s7 = sld [smem:[#allocation31_spill]] }
  0xe6   : > { %p4874_p1 = pnand %p3817_p5, %p4804_p12  ;;  %p4882_p11 = pnand %p3817_p5, %p4828_p9 }
  0xe7   : > { %s541_s1 = sand.u32 1, %s4454_s28   ;;  %s543_s8 = sand.u32 1, %s4422_s20  }
  0xe8   : > { %s522_s16 = scalar_lea.sflag [#allocation5], %s521_s10  ;;  %p4254_p8 = pneg %p4874_p1 }
  0xeb   : > { %s4866_s11 = scalar_lea.hbm %s5386_s7, %s3384_s12  ;;  %s4257_s2 = scalar_lea.hbm %s5386_s7, 512 }
  0xec   : > { %s4252_s12 = scalar_lea.hbm %s4866_s11, 128  ;;  %p4258_p9 = scmp.lt.u32.totalorder %s4866_s11, %s5386_s7 }
  0xed   : > { %p4253_p4 = scmp.ne.s32.totalorder %s4866_s11, %s4252_s12  ;;  %p4259_p3 = scmp.lt.u32.totalorder %s4257_s2, %s4252_s12 }
  0xee   : > { %p4261_p5 = scmp.lt.u32.totalorder %s4252_s12, %s4866_s11 }
  0xef   : > { %p4255_p12 = pnand %p4254_p8, %p4253_p4  ;;  %p4260_p13 = por %p4259_p3, %p4258_p9 }
  0xf1   : > { %p4256_p10 = pneg %p4255_p12  ;;  %p4262_p6 = por %p4261_p5, %p4260_p13 }
  0xf3   : > { %p4263_p2 = pnand %p4262_p6, %p4256_p10 }
  0xf5   : > { %4266 = shalt.err (!%p4263_p2)
}
  0xf6   : > { %s4267_s10 = scalar_lea.vmem %s4868_s5, 128  ;;  %s4466_s30 = smov [#allocation4]  }
  0xf7   : > { %p4268_p4 = scmp.ne.s32.totalorder %s4868_s5, %s4267_s10  ;;  %s4272_s17 = sshll.u32 %s4466_s30, 4  ;;  %s4273_s17 = int_to_ptr.vmem [resolvable:$false] %s4272_s17 }
  0xf8   : > { %s4274_s0 = scalar_lea.vmem %s4273_s17, 256  ;;  %p4275_p0 = scmp.lt.s32.totalorder %s4868_s5, %s4273_s17 }
  0xf9   : > { %p4270_p12 = pnand %p4268_p4, %p4254_p8  ;;  %p4276_p9 = scmp.lt.s32.totalorder %s4274_s0, %s4267_s10 }
  0xfb   : > { %p4271_p7 = pneg %p4270_p12  ;;  %p4277_p3 = por %p4276_p9, %p4275_p0 }
  0xfd   : > { %p4278_p13 = pnand %p4277_p3, %p4271_p7 }
  0xff   : > { %4281 = shalt.err (!%p4278_p13)
}
 0x100   : > { %3803 = dma.hbm_to_vmem [thread:$0]  (!%p4874_p1), %s4866_s11, 128, %s4868_s5, %s522_s16  }
 0x101   : > { %s3385_s12 = sshll.u32 %s543_s8, 4  ;;  %s3526_s2 = sshll.u32 %s4450_s27, 8 }
 0x102   : > { %s5389_s17 = sld [smem:[#allocation32_spill]]  ;;  %s545_s13 = scalar_lea.vmem [#allocation7], %s3385_s12 }
 0x103   : > { %s552_s0 = sshll.u32 %s545_s13, 4  ;;  %s4925_s7 = scalar_lea.sflag [#allocation8], %s541_s1  ;;  %s4921_s0 = int_to_ptr.vmem [resolvable:$true] %s552_s0 }
 0x104   : > { %p4284_p7 = pneg %p4882_p11 }
 0x108   : > { %s4919_s10 = scalar_lea.hbm %s5389_s17, %s3526_s2  ;;  %s4287_s16 = scalar_lea.hbm %s5389_s17, 512 }
 0x109   : > { %s4282_s5 = scalar_lea.hbm %s4919_s10, 256  ;;  %p4288_p1 = scmp.lt.u32.totalorder %s4919_s10, %s5389_s17 }
 0x10a   : > { %p4283_p0 = scmp.ne.s32.totalorder %s4919_s10, %s4282_s5  ;;  %p4289_p8 = scmp.lt.u32.totalorder %s4287_s16, %s4282_s5 }
 0x10b   : > { %p4291_p5 = scmp.lt.u32.totalorder %s4282_s5, %s4919_s10 }
 0x10c   : > { %p4285_p2 = pnand %p4284_p7, %p4283_p0  ;;  %p4290_p10 = por %p4289_p8, %p4288_p1 }
 0x10e   : > { %p4286_p6 = pneg %p4285_p2  ;;  %p4292_p4 = por %p4291_p5, %p4290_p10 }
 0x110   : > { %p4293_p12 = pnand %p4292_p4, %p4286_p6 }
 0x112   : > { %4296 = shalt.err (!%p4293_p12)
}
 0x113   : > { %s4297_s1 = scalar_lea.vmem %s4921_s0, 256  ;;  %s4467_s15 = smov [#allocation7]  }
 0x114   : > { %p4298_p9 = scmp.ne.s32.totalorder %s4921_s0, %s4297_s1  ;;  %s4302_s30 = sshll.u32 %s4467_s15, 4  ;;  %s4303_s30 = int_to_ptr.vmem [resolvable:$false] %s4302_s30 }
 0x115   : > { %s4304_s13 = scalar_lea.vmem %s4303_s30, 512  ;;  %p4305_p0 = scmp.lt.s32.totalorder %s4921_s0, %s4303_s30 }
 0x116   : > { %p4300_p3 = pnand %p4298_p9, %p4284_p7  ;;  %p4306_p2 = scmp.lt.s32.totalorder %s4304_s13, %s4297_s1 }
 0x118   : > { %p4301_p13 = pneg %p4300_p3  ;;  %p4307_p1 = por %p4306_p2, %p4305_p0 }
 0x11a   : > { %p4308_p8 = pnand %p4307_p1, %p4301_p13 }
 0x11c   : > { %4311 = shalt.err (!%p4308_p8)
}
 0x11d   : > { %s4468_s5 = smov 128   ;;  %s4469_s11 = smov 8  }
 0x11e   : > { %3806 = dma.hbm_to_vmem [thread:$0]  (!%p4882_p11), %s4919_s10, 256, %s4921_s0, %s4925_s7, %s4468_s5, %s4468_s5, %s4469_s11  }
 0x11f   : > { %s5390_s8 = sld [smem:[#allocation29_spill]] }
 0x125   : > { %p5391_p7 = scmp.ne.s32.totalorder %s5390_s8, 0 }
 0x126   : > { %s4956_s16 = sand.u32 (!%p5391_p7), 1, %s4430_s22   ;;  %p5392_p6 = scmp.ne.s32.totalorder (!%p5391_p7), %s5380_s14, 0 }
 0x127   : > { %564 = sbr.rel (%p5391_p7) target bundleno = 3601 (0xe11), region = 80  ;;  %s3389_s2 = sshll.u32 (!%p5391_p7), %s4956_s16, 3 }
 0x128   : > { %s567_s12 = scalar_lea.sflag (!%p5391_p7), [#allocation5], %s4956_s16  ;;  %s4960_s1 = scalar_lea.vmem (!%p5391_p7), [#allocation4], %s3389_s2 }
 0x12e   : > { %4385 = dma.done.wait (%p5392_p6), %s567_s12, 128  }
 0x12f   : > { %4387 = vsyncadd (%p5392_p6), %s567_s12, 4294967168  ;;  %s575_s7 = sand.u32 1, %s4622_s29   ;;  %s577_s6 = sand.u32 1, %s4418_s19  }
 0x130   : > { %s3390_s10 = sshll.u32 %s577_s6, 4  ;;  %s576_s0 = scalar_lea.sflag [#allocation8], %s575_s7 }
 0x131   : > { %s579_s15 = scalar_lea.vmem [#allocation7], %s3390_s10  ;;  %p5393_p11 = scmp.ne.s32.totalorder %s5383_s18, 0 }
 0x133   : > { %4389 = dma.done.wait (%p5393_p11), %s576_s0, 256  }
 0x134   : > { %4391 = vsyncadd (%p5393_p11), %s576_s0, 4294967040  ;;  %p5394_p10 = scmp.eq.s32.totalorder %s4622_s29, 0 }
 0x136   : > { %4393 = dma.done.wait (%p5394_p10), [#allocation8], 1024   ;;  %p5395_p5 = pmov %p5394_p10 }
 0x138   : > { %4395 = vsyncadd (%p5395_p5), [#allocation8], 4294966272  ;;  %p5396_p4 = pmov %p5395_p5 }
 0x13a   : > { %4397 = dma.done.wait (%p5396_p4), [#allocation11], 2048   ;;  %p5397_p12 = pmov %p5396_p4 }
 0x13b   : > { %p5398_p9 = pmov %p5396_p4 }
 0x13c   : > { %4399 = vsyncadd (%p5397_p12), [#allocation11], 4294965248 }
 0x13d   : > { %4401 = dma.done.wait (%p5398_p9), [#allocation14], 5120   ;;  %p5399_p3 = pmov %p5396_p4 }
 0x13f   : > { %4403 = vsyncadd (%p5399_p3), [#allocation14], 4294962176  ;;  %p5400_p13 = pmov %p5399_p3 }
 0x140   : > { %p5401_p0 = pmov %p5399_p3 }
 0x141   : > { %4405 = dma.done.wait (%p5400_p13), [#allocation17], 4096  }
 0x142   : > { %4407 = vsyncadd (%p5401_p0), [#allocation17], 4294963200  ;;  %s4988_s14 = scalar_lea.vmem [#allocation18], %s3389_s2  ;;  %s5402_s18 = sld [smem:[#allocation27_spill]] }
 0x148   : > { %p3398_p2 = scmp.ne.s32.totalorder %s5402_s18, 0 }
 0x149   : > { %v660_v0 = vld [vmem:[%s579_s15] sm:$0xff] (!%p3398_p2)  ;;  %v661_v1 = vld [vmem:[%s579_s15 + $0x8] sm:$0xff] (!%p3398_p2)  ;;  %v4470_v4 = vmov (!%p3398_p2), 0.0   ;;  %vm4471_vm0 = vmmov (!%p3398_p2), 0   ;;  %s5403_s13 = sld [smem:[#allocation33_spill]] (!%p3398_p2)  ;;  %s5404_s8 = sld [smem:[#allocation34_spill]] (!%p3398_p2)  ;;  %v939_v54 = vlaneseq (!%p3398_p2) }
 0x14a   : > { %659 = sbr.rel (%p3398_p2) target bundleno = 1027 (0x403), region = 116  ;;  %664 = vadd.xlane.f32.xlu0 (!%p3398_p2), %v660_v0  ;;  %v3940_v2 = vld [vmem:[#allocation10] sm:$0xff] (!%p3398_p2)   ;;  %3623 = vmatprep.subr.bf16.mxu0 (!%p3398_p2), %v4470_v4  ;;  %v3942_v13 = vld [vmem:[#allocation10 + $0x8] sm:$0xff] (!%p3398_p2)   ;;  %v3944_v15 = vld [vmem:[#allocation10 + $0x10] sm:$0xff] (!%p3398_p2)   ;;  %s4472_s2 = smov (!%p3398_p2), 64   ;;  %vm1210_vm1 = vcmask (!%p3398_p2), 261120  }
 0x14b   : > { %v3941_v3 = vld [vmem:[#allocation12] sm:$0xff] (!%p3398_p2)   ;;  %3643 = vmatprep.subr.bf16.mxu1 (!%p3398_p2), %v4470_v4  ;;  %3624 = vmatpush3.bf16.msra.mxu0 (!%p3398_p2), %v3940_v2  ;;  %v3943_v14 = vld [vmem:[#allocation12 + $0x8] sm:$0xff] (!%p3398_p2)   ;;  %v3945_v16 = vld [vmem:[#allocation12 + $0x10] sm:$0xff] (!%p3398_p2)   ;;  %s4473_s12 = smov (!%p3398_p2), 96   ;;  %s4474_s7 = smov (!%p3398_p2), 32   ;;  %v940_v58 = vshrl.u32 (!%p3398_p2), %v939_v54, 7 }
 0x14c   : > { %3644 = vmatpush3.bf16.msra.mxu1 (!%p3398_p2), %v3941_v3  ;;  %3625 = vmatprep.subr.bf16.mxu0 (!%p3398_p2), %v4470_v4  ;;  %v3946_v17 = vld [vmem:[#allocation10 + $0x18] sm:$0xff] (!%p3398_p2)   ;;  %v3948_v19 = vld [vmem:[#allocation10 + $0x20] sm:$0xff] (!%p3398_p2)   ;;  %v3950_v21 = vld [vmem:[#allocation10 + $0x28] sm:$0xff] (!%p3398_p2)   ;;  %v4475_v52 = vmov (!%p3398_p2), 1983009808  }
 0x14d   : > { %3645 = vmatprep.subr.bf16.mxu1 (!%p3398_p2), %v4470_v4  ;;  %v3947_v18 = vld [vmem:[#allocation12 + $0x18] sm:$0xff] (!%p3398_p2)   ;;  %v3949_v20 = vld [vmem:[#allocation12 + $0x20] sm:$0xff] (!%p3398_p2)   ;;  %3639 = vmatprep.mubr.msk.bf16.mxu0 (!%p3398_p2), %vm4471_vm0, %v4470_v4  ;;  %v3951_v22 = vld [vmem:[#allocation12 + $0x28] sm:$0xff] (!%p3398_p2)   ;;  %v937_v53 = vunpack.c.l.s4 (!%p3398_p2), %v4475_v52  ;;  %v4476_v55 = vmov (!%p3398_p2), 1934713408  }
 0x14e   : > { %666 = vadd.xlane.f32.xlu0 (!%p3398_p2), %v661_v1  ;;  %3659 = vmatprep.mubr.msk.bf16.mxu1 (!%p3398_p2), %vm4471_vm0, %v4470_v4  ;;  %v3952_v23 = vld [vmem:[#allocation10 + $0x30] sm:$0xff] (!%p3398_p2)   ;;  %v3954_v25 = vld [vmem:[#allocation10 + $0x38] sm:$0xff] (!%p3398_p2)   ;;  %v969_v56 = vunpack.c.l.s4 (!%p3398_p2), %v4476_v55 }
 0x14f   : > { %3626 = vmatpush3.bf16.msra.mxu0 (!%p3398_p2), %v3942_v13  ;;  %v3953_v24 = vld [vmem:[#allocation12 + $0x30] sm:$0xff] (!%p3398_p2)   ;;  %v3955_v26 = vld [vmem:[#allocation12 + $0x38] sm:$0xff] (!%p3398_p2)   ;;  %v938_v57 = vunpack.c.0.s8 (!%p3398_p2), %v937_v53 }
 0x150   : > { %3646 = vmatpush3.bf16.msra.mxu1 (!%p3398_p2), %v3943_v14  ;;  %3627 = vmatprep.subr.bf16.mxu0 (!%p3398_p2), %v4470_v4  ;;  %v3399_v35 = vld [vmem:[%s5403_s13] ss:$0 sm:$0xff] (!%p3398_p2)  ;;  %v970_v61 = vunpack.c.0.s8 (!%p3398_p2), %v969_v56 }
 0x151   : > { %3647 = vmatprep.subr.bf16.mxu1 %v4470_v4  ;;  %v3400_v39 = vld [vmem:[%s5404_s8] ss:$0 sm:$0xff]  ;;  %v5007_v62 = vsub.s32 %v938_v57, %v940_v58 }
 0x153   : > { %3628 = vmatpush3.bf16.msra.mxu0 %v3944_v15 }
 0x154   : > { %3648 = vmatpush3.bf16.msra.mxu1 %v3945_v16  ;;  %3629 = vmatprep.subr.bf16.mxu0 %v4470_v4 }
 0x155   : > { %3649 = vmatprep.subr.bf16.mxu1 %v4470_v4 }
 0x157   : > { %3630 = vmatpush3.bf16.msra.mxu0 %v3946_v17 }
 0x158   : > { %3650 = vmatpush3.bf16.msra.mxu1 %v3947_v18  ;;  %3631 = vmatprep.subr.bf16.mxu0 %v4470_v4 }
 0x159   : > { %3651 = vmatprep.subr.bf16.mxu1 %v4470_v4 }
 0x15b   : > { %3632 = vmatpush3.bf16.msra.mxu0 %v3948_v19 }
 0x15c   : > { %3652 = vmatpush3.bf16.msra.mxu1 %v3949_v20  ;;  %3633 = vmatprep.subr.bf16.mxu0 %v4470_v4 }
 0x15d   : > { %3653 = vmatprep.subr.bf16.mxu1 %v4470_v4 }
 0x15f   : > { %3634 = vmatpush3.bf16.msra.mxu0 %v3950_v21 }
 0x160   : > { %3654 = vmatpush3.bf16.msra.mxu1 %v3951_v22  ;;  %3635 = vmatprep.subr.bf16.mxu0 %v4470_v4 }
 0x161   : > { %3655 = vmatprep.subr.bf16.mxu1 %v4470_v4 }
 0x163   : > { %3636 = vmatpush3.bf16.msra.mxu0 %v3952_v23 }
 0x164   : > { %3656 = vmatpush3.bf16.msra.mxu1 %v3953_v24  ;;  %3637 = vmatprep.subr.bf16.mxu0 %v4470_v4 }
 0x165   : > { %3657 = vmatprep.subr.bf16.mxu1 %v4470_v4 }
 0x167   : > { %3638 = vmatpush3.bf16.msra.mxu0 %v3954_v25 }
 0x168   : > { %3658 = vmatpush3.bf16.msra.mxu1 %v3955_v26 }
 0x1d7   : > { %v665_v5 = vpop.xlane.xlu0 %664 }
 0x1d8   : > { %v669_v6 = vmul.f32 0.0078125, %v665_v5  ;;  %v5009_v5 = vsub.s32 %v970_v61, %v940_v58 }
 0x1da   : > { %v671_v7 = vsub.f32 %v660_v0, %v669_v6 }
 0x1db   : > { %v667_v8 = vpop.xlane.xlu0 %666 }
 0x1dc   : > { %v670_v9 = vmul.f32 0.0078125, %v667_v8  ;;  %v673_v10 = vmul.f32 %v671_v7, %v671_v7 }
 0x1de   : > { %v672_v11 = vsub.f32 %v661_v1, %v670_v9  ;;  %675 = vadd.xlane.f32.xlu1 %v673_v10 }
 0x1e0   : > { %v674_v12 = vmul.f32 %v672_v11, %v672_v11 }
 0x1e2   : > { %677 = vadd.xlane.f32.xlu1 %v674_v12 }
 0x26b   : > { %v676_v27 = vpop.xlane.xlu1 %675 }
 0x26c   : > { %v679_v28 = vmul.f32 0.0078125, %v676_v27 }
 0x26e   : > { %v681_v29 = vadd.f32 1e-05, %v679_v28 }
 0x26f   : > { %v678_v30 = vpop.xlane.xlu1 %677 }
 0x270   : > { %3956 = vrsqrt.f32 %v681_v29  ;;  %v680_v31 = vmul.f32 0.0078125, %v678_v30 }
 0x272   : > { %v682_v32 = vadd.f32 1e-05, %v680_v31 }
 0x274   : > { %3958 = vrsqrt.f32 %v682_v32 }
 0x27a   : > { %v3957_v33 = vpop.eup %3956 }
 0x27b   : > { %v685_v34 = vmul.f32 %v3957_v33, %v671_v7 }
 0x27d   : > { %v693_v38 = vmul.f32 %v3399_v35, %v685_v34 }
 0x27e   : > { %v3959_v36 = vpop.eup %3958 }
 0x27f   : > { %v686_v37 = vmul.f32 %v3959_v36, %v672_v11  ;;  %v701_v41 = vadd.f32 %v3400_v39, %v693_v38 }
 0x281   : > { %v694_v40 = vmul.f32 %v3399_v35, %v686_v37 }
 0x283   : > { %v702_v42 = vadd.f32 %v3400_v39, %v694_v40 }
 0x285   : > { %v703_v43 = vpack.c.bf16 %v702_v42, %v701_v41 }
 0x287   : > { %3640 = vmatmul.mubr.bf16.vlgmr.msra.gmra.mrb[0].mxu0 %v703_v43  ;;  %3660 = vmatmul.mubr.bf16.vlgmr.msra.gmra.mrb[0].mxu1 %v703_v43 }
 0x35a   : > { %v802_v44 = vpop.f32.mrb[0].mxu0  ;;  %v4997_v45 = vpop.f32.mrb[0].mxu1 }
 0x35b   : > { %v3661_v46 = vpop.f32.mrb[1].mxu1  ;;  %922 = vrot.lane.b32.xlu1 %v802_v44, %s4472_s2  ;;  %916 = vrot.lane.b32.xlu0 %v802_v44, %s4473_s12  ;;  %v3641_v47 = vpop.f32.mrb[1].mxu0 }
 0x35c   : > { %v805_v48 = vpop.f32.mrb[2].mxu0  ;;  %v4999_v49 = vpop.f32.mrb[2].mxu1 }
 0x35d   : > { %v3642_v50 = vpop.f32.mrb[3].mxu0  ;;  %v3662_v51 = vpop.f32.mrb[3].mxu1 }
 0x35f   : > { %928 = vrot.lane.b32.xlu0 %v802_v44, %s4474_s7  ;;  %918 = vrot.lane.b32.xlu1 %v805_v48, %s4473_s12 }
 0x363   : > { %1217 = vrot.lane.b32.xlu0 %v4997_v45, %s4473_s12  ;;  %924 = vrot.lane.b32.xlu1 %v805_v48, %s4472_s2 }
 0x367   : > { %1223 = vrot.lane.b32.xlu0 %v4997_v45, %s4472_s2  ;;  %930 = vrot.lane.b32.xlu1 %v805_v48, %s4474_s7 }
 0x36b   : > { %1229 = vrot.lane.b32.xlu0 %v4997_v45, %s4474_s7  ;;  %1219 = vrot.lane.b32.xlu1 %v4999_v49, %s4473_s12 }
 0x36f   : > { %1225 = vrot.lane.b32.xlu1 %v4999_v49, %s4472_s2 }
 0x373   : > { %1231 = vrot.lane.b32.xlu1 %v4999_v49, %s4474_s7 }
 0x3cd   : > { %v923_v59 = vpop.permute.xlu1 %922  ;;  %v917_v60 = vpop.permute.xlu0 %916 }
 0x3ce   : > { %v934_v63 = vcombine.low %v802_v44, %v923_v59  ;;  %v935_v0 = vcombine.high %v802_v44, %v923_v59 }
 0x3d0   : > { %v942_v6 = vrot.slane %v934_v63, %v5007_v62  ;;  %v949_v7 = vrot.slane %v935_v0, %v5007_v62 }
 0x3d1   : > { %v929_v1 = vpop.permute.xlu0 %928  ;;  %v919_v2 = vpop.permute.xlu1 %918 }
 0x3d2   : > { %v950_v3 = vcombine.low %v917_v60, %v929_v1  ;;  %v951_v4 = vcombine.high %v917_v60, %v929_v1 }
 0x3d4   : > { %v958_v8 = vrot.slane %v950_v3, %v5007_v62  ;;  %v965_v9 = vrot.slane %v951_v4, %v5007_v62 }
 0x3d5   : > { %v5015_v10 = vpop.permute.xlu0 %1217  ;;  %v925_v11 = vpop.permute.xlu1 %924 }
 0x3d6   : > { %v966_v12 = vcombine.low %v942_v6, %v958_v8  ;;  %v967_v13 = vcombine.high %v942_v6, %v958_v8  ;;  %v982_v14 = vcombine.low %v949_v7, %v965_v9  ;;  %v983_v15 = vcombine.high %v949_v7, %v965_v9 }
 0x3d7   : > { %v1002_v16 = vcombine.low %v805_v48, %v925_v11  ;;  %v1003_v17 = vcombine.high %v805_v48, %v925_v11 }
 0x3d8   : > { %v974_v18 = vrot.slane %v966_v12, %v5009_v5  ;;  %v981_v19 = vrot.slane %v967_v13, %v5009_v5  ;;  %v990_v20 = vrot.slane %v982_v14, %v5009_v5  ;;  %v997_v21 = vrot.slane %v983_v15, %v5009_v5 }
 0x3d9   : > { %v931_v22 = vpop.permute.xlu1 %930  ;;  %v1224_v27 = vpop.permute.xlu0 %1223  ;;  %v1010_v28 = vrot.slane %v1002_v16, %v5007_v62  ;;  %v1017_v29 = vrot.slane %v1003_v17, %v5007_v62 }
 0x3da   : > { %v1070_v23 = vcombine.low %v974_v18, %v981_v19  ;;  %v3417_v24 = vcombine.high %v974_v18, %v981_v19  ;;  %v1086_v25 = vcombine.low %v990_v20, %v997_v21  ;;  %v3418_v26 = vcombine.high %v990_v20, %v997_v21 }
 0x3db   : > { %v1018_v30 = vcombine.low %v919_v2, %v931_v22  ;;  %v1019_v31 = vcombine.high %v919_v2, %v931_v22  ;;  %v1235_v36 = vcombine.low %v4997_v45, %v1224_v27  ;;  %v1236_v37 = vcombine.high %v4997_v45, %v1224_v27 }
 0x3dc   : > { %v1077_v32 = vrot.slane %v1070_v23, %v5007_v62  ;;  %v1085_v33 = vrot.slane %v3417_v24, %v5007_v62  ;;  %v1093_v34 = vrot.slane %v1086_v25, %v5007_v62  ;;  %v1101_v35 = vrot.slane %v3418_v26, %v5007_v62 }
 0x3dd   : > { %v1026_v38 = vrot.slane %v1018_v30, %v5007_v62  ;;  %v1033_v39 = vrot.slane %v1019_v31, %v5007_v62  ;;  %v5033_v52 = vpop.permute.xlu1 %1219  ;;  %v1230_v56 = vpop.permute.xlu0 %1229  ;;  %v1243_v59 = vrot.slane %v1235_v36, %v5007_v62  ;;  %v1250_v60 = vrot.slane %v1236_v37, %v5007_v62 }
 0x3de   : > { %v1102_v40 = vcombine.low %v1077_v32, %v1085_v33  ;;  %v1103_v41 = vcombine.high %v1077_v32, %v1085_v33  ;;  %v1118_v42 = vcombine.low %v1093_v34, %v1101_v35  ;;  %v1119_v43 = vcombine.high %v1093_v34, %v1101_v35 }
 0x3df   : > { %v1034_v44 = vcombine.low %v1010_v28, %v1026_v38  ;;  %v1035_v46 = vcombine.high %v1010_v28, %v1026_v38  ;;  %v1050_v47 = vcombine.low %v1017_v29, %v1033_v39  ;;  %v1051_v48 = vcombine.high %v1017_v29, %v1033_v39 }
 0x3e0   : > { %v1110_v50 = vrot.slane %v1102_v40, %v5009_v5  ;;  %v1126_v51 = vrot.slane %v1118_v42, %v5009_v5  ;;  %v1117_v57 = vrot.slane %v1103_v41, %v5009_v5  ;;  %v1133_v58 = vrot.slane %v1119_v43, %v5009_v5 }
 0x3e1   : > { %v1042_v45 = vrot.slane %v1034_v44, %v5009_v5  ;;  %v1049_v53 = vrot.slane %v1035_v46, %v5009_v5  ;;  %v1058_v54 = vrot.slane %v1050_v47, %v5009_v5  ;;  %v1065_v55 = vrot.slane %v1051_v48, %v5009_v5  ;;  %v1226_v16 = vpop.permute.xlu1 %1225 }
 0x3e2   : > { %v1134_v2 = vcombine.low %v1110_v50, %v1126_v51  ;;  %v1135_v3 = vcombine.high %v1110_v50, %v1126_v51  ;;  %v1251_v4 = vcombine.low %v5015_v10, %v1230_v56  ;;  %v1252_v6 = vcombine.high %v5015_v10, %v1230_v56 }
 0x3e3   : > { %v1138_v61 = vcombine.low %v1042_v45, %v1049_v53  ;;  %v3419_v63 = vcombine.high %v1042_v45, %v1049_v53  ;;  %v1154_v0 = vcombine.low %v1058_v54, %v1065_v55  ;;  %v3420_v1 = vcombine.high %v1058_v54, %v1065_v55 }
 0x3e4   : > { %v1136_v12 = vcombine.low %v1117_v57, %v1133_v58  ;;  %v1137_v13 = vcombine.high %v1117_v57, %v1133_v58  ;;  %v1259_v14 = vrot.slane %v1251_v4, %v5007_v62  ;;  %v1266_v15 = vrot.slane %v1252_v6, %v5007_v62 }
 0x3e5   : > { %v1145_v7 = vrot.slane %v1138_v61, %v5007_v62  ;;  %v1153_v8 = vrot.slane %v3419_v63, %v5007_v62  ;;  %v1161_v9 = vrot.slane %v1154_v0, %v5007_v62  ;;  %v1169_v11 = vrot.slane %v3420_v1, %v5007_v62  ;;  %v1232_v38 = vpop.permute.xlu1 %1231 }
 0x3e6   : > { %v1267_v10 = vcombine.low %v1243_v59, %v1259_v14  ;;  %v1268_v21 = vcombine.high %v1243_v59, %v1259_v14  ;;  %v1283_v22 = vcombine.low %v1250_v60, %v1266_v15  ;;  %v1284_v23 = vcombine.high %v1250_v60, %v1266_v15 }
 0x3e7   : > { %v1170_v17 = vcombine.low %v1145_v7, %v1153_v8  ;;  %v1171_v18 = vcombine.high %v1145_v7, %v1153_v8  ;;  %v1186_v19 = vcombine.low %v1161_v9, %v1169_v11  ;;  %v1187_v20 = vcombine.high %v1161_v9, %v1169_v11 }
 0x3e8   : > { %v1275_v28 = vrot.slane %v1267_v10, %v5009_v5  ;;  %v1282_v29 = vrot.slane %v1268_v21, %v5009_v5  ;;  %v1291_v30 = vrot.slane %v1283_v22, %v5009_v5  ;;  %v1298_v31 = vrot.slane %v1284_v23, %v5009_v5 }
 0x3e9   : > { %v1178_v24 = vrot.slane %v1170_v17, %v5009_v5  ;;  %v1185_v25 = vrot.slane %v1171_v18, %v5009_v5  ;;  %v1194_v26 = vrot.slane %v1186_v19, %v5009_v5  ;;  %v1201_v27 = vrot.slane %v1187_v20, %v5009_v5 }
 0x3ea   : > { %v1303_v36 = vcombine.low %v4999_v49, %v1226_v16  ;;  %v1304_v37 = vcombine.high %v4999_v49, %v1226_v16  ;;  %v1371_v43 = vcombine.low %v1275_v28, %v1282_v29  ;;  %v3421_v44 = vcombine.high %v1275_v28, %v1282_v29 }
 0x3eb   : > { %v1202_v32 = vcombine.low %v1178_v24, %v1194_v26  ;;  %v1203_v33 = vcombine.high %v1178_v24, %v1194_v26  ;;  %v1204_v34 = vcombine.low %v1185_v25, %v1201_v27  ;;  %v1205_v35 = vcombine.high %v1185_v25, %v1201_v27 }
 0x3ec   : > { %v1387_v46 = vcombine.low %v1291_v30, %v1298_v31  ;;  %v3422_v47 = vcombine.high %v1291_v30, %v1298_v31  ;;  %v1319_v48 = vcombine.low %v5033_v52, %v1232_v38  ;;  %v1320_v49 = vcombine.high %v5033_v52, %v1232_v38 }
 0x3ed   : > { %v1206_v39 = vpack.c.bf16 %v1202_v32, %v1134_v2  ;;  %v1207_v40 = vpack.c.bf16 %v1203_v33, %v1135_v3  ;;  %v1208_v41 = vpack.c.bf16 %v1204_v34, %v1136_v12  ;;  %v1209_v42 = vpack.c.bf16 %v1205_v35, %v1137_v13 }
 0x3ee   : > { %v1311_v50 = vrot.slane %v1303_v36, %v5007_v62  ;;  %v1318_v51 = vrot.slane %v1304_v37, %v5007_v62  ;;  %v1327_v45 = vrot.slane %v1319_v48, %v5007_v62  ;;  %v1334_v53 = vrot.slane %v1320_v49, %v5007_v62 }
 0x3ef   : > { %1211 = vst.msk [vmem:[#allocation2] sm:$0xff] %vm1210_vm1, %v1206_v39  ;;  %1212 = vst.msk [vmem:[#allocation2 + $0x8] sm:$0xff] %vm1210_vm1, %v1207_v40  ;;  %v1378_v54 = vrot.slane %v1371_v43, %v5007_v62  ;;  %v1386_v55 = vrot.slane %v3421_v44, %v5007_v62  ;;  %v1394_v56 = vrot.slane %v1387_v46, %v5007_v62 }
 0x3f0   : > { %1213 = vst.msk [vmem:[#allocation2 + $0x10] sm:$0xff] %vm1210_vm1, %v1208_v41  ;;  %1214 = vst.msk [vmem:[#allocation2 + $0x18] sm:$0xff] %vm1210_vm1, %v1209_v42  ;;  %v1402_v57 = vrot.slane %v3422_v47, %v5007_v62  ;;  %v1335_v58 = vcombine.low %v1311_v50, %v1327_v45  ;;  %v1336_v59 = vcombine.high %v1311_v50, %v1327_v45 }
 0x3f1   : > { %v1351_v60 = vcombine.low %v1318_v51, %v1334_v53  ;;  %v1352_v52 = vcombine.high %v1318_v51, %v1334_v53  ;;  %v1403_v2 = vcombine.low %v1378_v54, %v1386_v55  ;;  %v1404_v3 = vcombine.high %v1378_v54, %v1386_v55 }
 0x3f2   : > { %v1343_v61 = vrot.slane %v1335_v58, %v5009_v5  ;;  %v1350_v63 = vrot.slane %v1336_v59, %v5009_v5  ;;  %v1419_v4 = vcombine.low %v1394_v56, %v1402_v57  ;;  %v1420_v6 = vcombine.high %v1394_v56, %v1402_v57 }
 0x3f3   : > { %v1359_v0 = vrot.slane %v1351_v60, %v5009_v5  ;;  %v1366_v1 = vrot.slane %v1352_v52, %v5009_v5  ;;  %v1411_v16 = vrot.slane %v1403_v2, %v5009_v5  ;;  %v1418_v17 = vrot.slane %v1404_v3, %v5009_v5 }
 0x3f4   : > { %v1439_v7 = vcombine.low %v1343_v61, %v1350_v63  ;;  %v3423_v8 = vcombine.high %v1343_v61, %v1350_v63  ;;  %v1427_v18 = vrot.slane %v1419_v4, %v5009_v5  ;;  %v1434_v19 = vrot.slane %v1420_v6, %v5009_v5 }
 0x3f5   : > { %v1455_v9 = vcombine.low %v1359_v0, %v1366_v1  ;;  %v3424_v11 = vcombine.high %v1359_v0, %v1366_v1 }
 0x3f6   : > { %v1446_v12 = vrot.slane %v1439_v7, %v5007_v62  ;;  %v1454_v13 = vrot.slane %v3423_v8, %v5007_v62  ;;  %v1435_v26 = vcombine.low %v1411_v16, %v1427_v18  ;;  %v1436_v27 = vcombine.high %v1411_v16, %v1427_v18 }
 0x3f7   : > { %v1462_v14 = vrot.slane %v1455_v9, %v5007_v62  ;;  %v1470_v15 = vrot.slane %v3424_v11, %v5007_v62  ;;  %v1437_v28 = vcombine.low %v1418_v17, %v1434_v19  ;;  %v1438_v29 = vcombine.high %v1418_v17, %v1434_v19 }
 0x3f8   : > { %v1471_v20 = vcombine.low %v1446_v12, %v1454_v13  ;;  %v1472_v10 = vcombine.high %v1446_v12, %v1454_v13 }
 0x3f9   : > { %v1487_v21 = vcombine.low %v1462_v14, %v1470_v15  ;;  %v1488_v22 = vcombine.high %v1462_v14, %v1470_v15 }
 0x3fa   : > { %v1479_v23 = vrot.slane %v1471_v20, %v5009_v5  ;;  %v1486_v24 = vrot.slane %v1472_v10, %v5009_v5 }
 0x3fb   : > { %v1495_v25 = vrot.slane %v1487_v21, %v5009_v5  ;;  %v1502_v62 = vrot.slane %v1488_v22, %v5009_v5 }
 0x3fd   : > { %v1503_v30 = vcombine.low %v1479_v23, %v1495_v25  ;;  %v1504_v31 = vcombine.high %v1479_v23, %v1495_v25  ;;  %v1505_v32 = vcombine.low %v1486_v24, %v1502_v62  ;;  %v1506_v33 = vcombine.high %v1486_v24, %v1502_v62 }
 0x3ff   : > { %v1507_v34 = vpack.c.bf16 %v1503_v30, %v1435_v26  ;;  %v1508_v35 = vpack.c.bf16 %v1504_v31, %v1436_v27  ;;  %v1509_v36 = vpack.c.bf16 %v1505_v32, %v1437_v28  ;;  %v1510_v37 = vpack.c.bf16 %v1506_v33, %v1438_v29 }
 0x401   : > { %1511 = vst.msk [vmem:[#allocation3] sm:$0xff] %vm1210_vm1, %v1507_v34  ;;  %1512 = vst.msk [vmem:[#allocation3 + $0x8] sm:$0xff] %vm1210_vm1, %v1508_v35 }
 0x402   : > { %1513 = vst.msk [vmem:[#allocation3 + $0x10] sm:$0xff] %vm1210_vm1, %v1509_v36  ;;  %1514 = vst.msk [vmem:[#allocation3 + $0x18] sm:$0xff] %vm1210_vm1, %v1510_v37 }
 0x403 PF: > { %v5096_v5 = vld [vmem:[%s4960_s1] sm:$0xff]  ;;  %v3960_v38 = vld [vmem:[#allocation9] sm:$0xff]   ;;  %v3961_v39 = vld [vmem:[#allocation9 + $0x8] sm:$0xff]   ;;  %v4477_v40 = vmov 0.0   ;;  %vm4478_vm2 = vmmov 0   ;;  %s5405_s10 = sld [smem:[#allocation33_spill]]  ;;  %v1660_v8 = vlaneseq }
 0x404   : > { %1518 = vadd.xlane.f32.xlu0 %v5096_v5  ;;  %3663 = vmatprep.subr.bf16.mxu0 %v4477_v40  ;;  %v3962_v46 = vld [vmem:[#allocation9 + $0x10] sm:$0xff]   ;;  %v3963_v47 = vld [vmem:[#allocation9 + $0x18] sm:$0xff]   ;;  %v3964_v48 = vld [vmem:[#allocation9 + $0x20] sm:$0xff]   ;;  %s5406_s18 = sld [smem:[#allocation34_spill]]  ;;  %s4479_s29 = smov 32   ;;  %vm1826_vm3 = vcmask 261120  }
 0x405   : > { %3683 = vmatprep.subr.bf16.mxu1 %v4477_v40  ;;  %3664 = vmatpush3.bf16.msra.mxu0 %v3960_v38  ;;  %v3965_v49 = vld [vmem:[#allocation9 + $0x28] sm:$0xff]   ;;  %v3966_v50 = vld [vmem:[#allocation9 + $0x30] sm:$0xff]   ;;  %v3967_v51 = vld [vmem:[#allocation9 + $0x38] sm:$0xff]   ;;  %s4480_s30 = smov 96   ;;  %s4481_s13 = smov 64   ;;  %v5127_v13 = vshrl.u32 %v1660_v8, 7 }
 0x406   : > { %3665 = vmatprep.subr.bf16.mxu0 %v4477_v40  ;;  %3679 = vmatprep.mubr.msk.bf16.mxu0 %vm4478_vm2, %v4477_v40  ;;  %v1818_v3 = vld [vmem:[#allocation2] sm:$0xff]  ;;  %v4482_v6 = vmov 1983009808   ;;  %v4483_v9 = vmov 1934713408   ;;  %v4484_v28 = vmov 0  }
 0x407   : > { %3685 = vmatprep.mubr.msk.bf16.mxu1 %vm4478_vm2, %v4477_v40  ;;  %v1831_v4 = vsel %vm1826_vm3, %v1818_v3, 0  ;;  %v1658_v7 = vunpack.c.l.s4 %v4482_v6  ;;  %v1675_v11 = vunpack.c.l.s4 %v4483_v9  ;;  %v1820_v6 = vld [vmem:[#allocation2 + $0x10] sm:$0xff]  ;;  %vm2011_vm4 = vcmask 130048   ;;  %s5407_s8 = sld [smem:[#allocation39_spill]]  ;;  %s5408_s7 = sld [smem:[#allocation40_spill]] }
 0x408   : > { %3684 = vmatpush3.bf16.xpose.msra.mxu1 %v1831_v4  ;;  %v1923_v9 = vsel %vm1826_vm3, %v1820_v6, 0  ;;  %v1823_v6 = vld [vmem:[#allocation3 + $0x8] sm:$0xff]  ;;  %vm2381_vm5 = vcmask 523264   ;;  %vm2383_vm6 = vcmask 785408   ;;  %s3192_s15 = scalar_lea.sflag [#allocation6], %s4956_s16  ;;  %p5415_p8 = scmp.ne.s32.totalorder %s5384_s3, 0 }
 0x409   : > { %3666 = vmatpush3.bf16.msra.mxu0 %v3961_v39  ;;  %v3425_v56 = vld [vmem:[%s5405_s10] ss:$0 sm:$0xff]  ;;  %3689 = vmatprep.subr.bf16.mxu1 %v4477_v40  ;;  %v1659_v12 = vunpack.c.0.s8 %v1658_v7  ;;  %v1676_v14 = vunpack.c.0.s8 %v1675_v11  ;;  %s5409_s10 = sld [smem:[#allocation41_spill]] }
 0x40a   : > { %3667 = vmatprep.subr.bf16.mxu0 %v4477_v40  ;;  %v3426_v58 = vld [vmem:[%s5406_s18] ss:$0 sm:$0xff]  ;;  %s5410_s18 = sld [smem:[#allocation43_spill]] }
 0x40b   : > { %v5130_v15 = vsub.s32 %v1659_v12, %v5127_v13  ;;  %v5134_v19 = vsub.s32 %v1676_v14, %v5127_v13  ;;  %v1821_v12 = vld [vmem:[#allocation2 + $0x18] sm:$0xff] }
 0x40d   : > { %3668 = vmatpush3.bf16.msra.mxu0 %v3962_v46 }
 0x40e   : > { %3669 = vmatprep.subr.bf16.mxu0 %v4477_v40 }
 0x411   : > { %3670 = vmatpush3.bf16.msra.mxu0 %v3963_v47 }
 0x412   : > { %3671 = vmatprep.subr.bf16.mxu0 %v4477_v40 }
 0x415   : > { %3672 = vmatpush3.bf16.msra.mxu0 %v3964_v48 }
 0x416   : > { %3673 = vmatprep.subr.bf16.mxu0 %v4477_v40 }
 0x419   : > { %3674 = vmatpush3.bf16.msra.mxu0 %v3965_v49 }
 0x41a   : > { %3675 = vmatprep.subr.bf16.mxu0 %v4477_v40 }
 0x41d   : > { %3676 = vmatpush3.bf16.msra.mxu0 %v3966_v50 }
 0x41e   : > { %3677 = vmatprep.subr.bf16.mxu0 %v4477_v40 }
 0x421   : > { %3678 = vmatpush3.bf16.msra.mxu0 %v3967_v51 }
 0x422   : > { %3731 = vmatprep.subr.bf16.mxu0 %v4477_v40 }
 0x491   : > { %v1519_v41 = vpop.xlane.xlu0 %1518 }
 0x492   : > { %v1521_v42 = vmul.f32 0.0078125, %v1519_v41 }
 0x494   : > { %v1522_v43 = vsub.f32 %v5096_v5, %v1521_v42 }
 0x496   : > { %v1523_v44 = vmul.f32 %v1522_v43, %v1522_v43 }
 0x498   : > { %1524 = vadd.xlane.f32.xlu0 %v1523_v44 }
 0x525   : > { %v1525_v45 = vpop.xlane.xlu0 %1524 }
 0x526   : > { %v1526_v53 = vmul.f32 0.0078125, %v1525_v45 }
 0x528   : > { %v1527_v54 = vadd.f32 1e-05, %v1526_v53 }
 0x52a   : > { %4056 = vrsqrt.f32 %v1527_v54 }
 0x534   : > { %v4057_v55 = vpop.eup %4056 }
 0x535   : > { %v1529_v57 = vmul.f32 %v4057_v55, %v1522_v43 }
 0x537   : > { %v1536_v59 = vmul.f32 %v3425_v56, %v1529_v57 }
 0x539   : > { %v1543_v60 = vadd.f32 %v3426_v58, %v1536_v59 }
 0x53b   : > { %v1544_v52 = vpack.c.bf16 %v1543_v60, %v1543_v60 }
 0x53d   : > { %3680 = vmatmul.mubr.bf16.vlgmr.msra.gmra.mrb[0].mxu0 %v1544_v52 }
 0x53e   : > { %3747 = vmatprep.mubr.msk.bf16.mxu0 %vm4478_vm2, %v4477_v40 }
 0x610   : > { %v1643_v61 = vpop.f32.mrb[0].mxu0 }
 0x611   : > { %v1649_v63 = vpack.c.bf16 %v1643_v61, %v1643_v61  ;;  %v3681_v0 = vpop.f32.mrb[1].mxu0 }
 0x612   : > { %v1646_v1 = vpop.f32.mrb[2].mxu0 }
 0x613   : > { %1655 = vrot.lane.b32.xlu0 %v1649_v63, %s4479_s29  ;;  %1651 = vrot.lane.b32.xlu1 %v1649_v63, %s4480_s30  ;;  %v3682_v2 = vpop.f32.mrb[3].mxu0  ;;  %v1663_v25 = vrot.slane %v1649_v63, %v5130_v15 }
 0x617   : > { %1653 = vrot.lane.b32.xlu1 %v1649_v63, %s4481_s13  ;;  %v1819_v63 = vld [vmem:[#allocation2 + $0x8] sm:$0xff] }
 0x618   : > { %v1877_v3 = vsel %vm1826_vm3, %v1819_v63, 0  ;;  %v1822_v63 = vld [vmem:[#allocation3] sm:$0xff] }
 0x685   : > { %v1656_v16 = vpop.permute.xlu0 %1655  ;;  %v1652_v17 = vpop.permute.xlu1 %1651 }
 0x686   : > { %v1705_v18 = vrot.slane %v1656_v16, %v5130_v15  ;;  %v1697_v20 = vrot.slane %v1652_v17, %v5130_v15  ;;  %v1969_v17 = vsel %vm1826_vm3, %v1821_v12, 0  ;;  %v1824_v12 = vld [vmem:[#allocation3 + $0x10] sm:$0xff] }
 0x688   : > { %v1706_v10 = vcombine.low %v1697_v20, %v1705_v18  ;;  %v1707_v21 = vcombine.high %v1697_v20, %v1705_v18 }
 0x689   : > { %v1654_v22 = vpop.permute.xlu1 %1653 }
 0x68a   : > { %v1714_v23 = vrot.slane %v1706_v10, %v5134_v19  ;;  %v1671_v24 = vrot.slane %v1654_v22, %v5130_v15  ;;  %v1721_v62 = vrot.slane %v1707_v21, %v5134_v19 }
 0x68c   : > { %v1672_v26 = vcombine.low %v1663_v25, %v1671_v24  ;;  %v1673_v27 = vcombine.high %v1663_v25, %v1671_v24  ;;  %v1722_v29 = vcombine.high %v1714_v23, %v4484_v28  ;;  %v1723_v32 = vcombine.high %v1721_v62, %v4484_v28 }
 0x68d   : > { %v1729_v33 = vshrl.u32 %v1714_v23, 16  ;;  %v1745_v39 = vshrl.u32 %v1721_v62, 16 }
 0x68e   : > { %v1680_v30 = vrot.slane %v1672_v26, %v5134_v19  ;;  %v1687_v31 = vrot.slane %v1673_v27, %v5134_v19  ;;  %v1737_v38 = vshrl.u32 %v1722_v29, 16  ;;  %v1753_v48 = vshrl.u32 %v1723_v32, 16 }
 0x690   : > { %v1688_v34 = vcombine.high %v1680_v30, %v4484_v28  ;;  %v1689_v35 = vcombine.high %v1687_v31, %v4484_v28  ;;  %v1726_v36 = vpack.i.b16 %v1714_v23, %v1680_v30  ;;  %v1728_v37 = vshrl.u32 %v1680_v30, 16 }
 0x691   : > { %v1742_v41 = vpack.i.b16 %v1721_v62, %v1687_v31  ;;  %v1744_v42 = vshrl.u32 %v1687_v31, 16 }
 0x692   : > { %v1730_v43 = vpack.i.b16 %v1729_v33, %v1728_v37  ;;  %v1734_v44 = vpack.i.b16 %v1722_v29, %v1688_v34  ;;  %v1736_v46 = vshrl.u32 %v1688_v34, 16  ;;  %v1750_v47 = vpack.i.b16 %v1723_v32, %v1689_v35 }
 0x693   : > { %v1746_v49 = vpack.i.b16 %v1745_v39, %v1744_v42  ;;  %v1752_v50 = vshrl.u32 %v1689_v35, 16  ;;  %v1756_v51 = vcombine.low %v1726_v36, %v1742_v41 }
 0x694   : > { %v1738_v45 = vpack.i.b16 %v1737_v38, %v1736_v46  ;;  %v1764_v53 = vcombine.low %v1734_v44, %v1750_v47 }
 0x695   : > { %v1754_v54 = vpack.i.b16 %v1753_v48, %v1752_v50  ;;  %v1781_v55 = vcombine.low %v1730_v43, %v1746_v49  ;;  %v1763_v57 = vrot.slane %v1756_v51, %v5130_v15 }
 0x696   : > { %v1771_v56 = vrot.slane %v1764_v53, %v5130_v15 }
 0x697   : > { %v1789_v58 = vcombine.low %v1738_v45, %v1754_v54  ;;  %v1788_v59 = vrot.slane %v1781_v55, %v5130_v15 }
 0x698   : > { %v1772_v60 = vcombine.low %v1763_v57, %v1771_v56 }
 0x699   : > { %v1796_v52 = vrot.slane %v1789_v58, %v5130_v15 }
 0x69a   : > { %v1779_v0 = vrot.slane %v1772_v60, %v5134_v19 }
 0x69b   : > { %v1797_v61 = vcombine.low %v1788_v59, %v1796_v52 }
 0x69c   : > { %v1809_v7 = vshrl.u32 %v1779_v0, 16  ;;  %v1780_v14 = vcombine.high %v1779_v0, %v4484_v28 }
 0x69d   : > { %v1804_v1 = vrot.slane %v1797_v61, %v5134_v19 }
 0x69e   : > { %v1815_v20 = vshrl.u32 %v1780_v14, 16 }
 0x69f   : > { %v1808_v2 = vpack.i.b16 %v1804_v1, %v1779_v0  ;;  %v1810_v4 = vshrl.u32 %v1804_v1, 16  ;;  %v1805_v11 = vcombine.high %v1804_v1, %v4484_v28 }
 0x6a1   : > { %3686 = vmatmul.mubr.msk.bf16.vlgmr.msra.gmra.mrb[0].mxu1 %vm1826_vm3, %v1808_v2  ;;  %v1811_v8 = vpack.i.b16 %v1810_v4, %v1809_v7  ;;  %v1814_v16 = vpack.i.b16 %v1805_v11, %v1780_v14  ;;  %v1816_v18 = vshrl.u32 %v1805_v11, 16 }
 0x6a2   : > { %3690 = vmatpush3.bf16.xpose.msra.mxu1 %v1877_v3  ;;  %3691 = vmatprep.mubr.msk.bf16.mxu1 %vm4478_vm2, %v4477_v40 }
 0x6a3   : > { %3695 = vmatprep.subr.bf16.mxu1 %v4477_v40  ;;  %v1817_v10 = vpack.i.b16 %v1816_v18, %v1815_v20  ;;  %v1825_v20 = vld [vmem:[#allocation3 + $0x18] sm:$0xff] }
 0x6a9   : > { %3692 = vmatmul.mubr.msk.bf16.vlgmr.msra.gmra.mrb[4].mxu1 %vm1826_vm3, %v1811_v8 }
 0x6aa   : > { %3696 = vmatpush3.bf16.xpose.msra.mxu1 %v1923_v9  ;;  %3697 = vmatprep.mubr.msk.bf16.mxu1 %vm4478_vm2, %v4477_v40 }
 0x6ab   : > { %3701 = vmatprep.subr.bf16.mxu1 %v4477_v40 }
 0x6b1   : > { %3698 = vmatmul.mubr.msk.bf16.vlgmr.msra.gmra.mrb[8].mxu1 %vm1826_vm3, %v1814_v16 }
 0x6b2   : > { %3702 = vmatpush3.bf16.xpose.msra.mxu1 %v1969_v17  ;;  %3703 = vmatprep.mubr.msk.bf16.mxu1 %vm4478_vm2, %v4477_v40 }
 0x6b3   : > { %3707 = vmatprep.subr.bf16.mxu1 %v4477_v40 }
 0x6b9   : > { %3704 = vmatmul.mubr.msk.bf16.vlgmr.msra.gmra.mrb[12].mxu1 %vm1826_vm3, %v1817_v10 }
 0x6ba   : > { %3709 = vmatprep.mubr.msk.bf16.mxu1 %vm4478_vm2, %v4477_v40  ;;  %3708 = vmatpush3.bf16.msra.mxu1 %v1822_v63 }
 0x6bb   : > { %3713 = vmatprep.subr.bf16.mxu1 %v4477_v40 }
 0x774   : > { %v1867_v21 = vpop.f32.mrb[0].mxu1 }
 0x775   : > { %v3687_v22 = vpop.f32.mrb[1].mxu1  ;;  %v2012_v23 = vsel %vm2011_vm4, %v1867_v21, -inf }
 0x776   : > { %2013 = vmax.xlane.f32.xlu1 %v2012_v23  ;;  %v1870_v24 = vpop.f32.mrb[2].mxu1  ;;  %v3968_v23 = vld [vmem:[#allocation13] sm:$0xff]  }
 0x777   : > { %v3688_v25 = vpop.f32.mrb[3].mxu1  ;;  %3732 = vmatpush3.bf16.msra.mxu0 %v3968_v23  ;;  %v3969_v24 = vld [vmem:[#allocation13 + $0x8] sm:$0xff]  }
 0x778   : > { %3733 = vmatprep.subr.bf16.mxu0 %v4477_v40  ;;  %v3970_v25 = vld [vmem:[#allocation13 + $0x10] sm:$0xff]  }
 0x77b   : > { %3734 = vmatpush3.bf16.msra.mxu0 %v3969_v24 }
 0x77c   : > { %v1913_v62 = vpop.f32.mrb[4].mxu1  ;;  %3735 = vmatprep.subr.bf16.mxu0 %v4477_v40 }
 0x77d   : > { %v3693_v26 = vpop.f32.mrb[5].mxu1  ;;  %v2015_v27 = vsel %vm2011_vm4, %v1913_v62, -inf }
 0x77e   : > { %2016 = vmax.xlane.f32.xlu0 %v2015_v27  ;;  %v1916_v29 = vpop.f32.mrb[6].mxu1  ;;  %v3972_v26 = vld [vmem:[#allocation13 + $0x20] sm:$0xff]   ;;  %v3973_v27 = vld [vmem:[#allocation13 + $0x28] sm:$0xff]  }
 0x77f   : > { %v3694_v30 = vpop.f32.mrb[7].mxu1  ;;  %3736 = vmatpush3.bf16.msra.mxu0 %v3970_v25 }
 0x780   : > { %3737 = vmatprep.subr.bf16.mxu0 %v4477_v40 }
 0x784   : > { %v1959_v31 = vpop.f32.mrb[8].mxu1 }
 0x785   : > { %v3699_v32 = vpop.f32.mrb[9].mxu1  ;;  %v2018_v33 = vsel %vm2011_vm4, %v1959_v31, -inf }
 0x786   : > { %2019 = vmax.xlane.f32.xlu1 %v2018_v33  ;;  %v1962_v34 = vpop.f32.mrb[10].mxu1 }
 0x787   : > { %v3700_v35 = vpop.f32.mrb[11].mxu1 }
 0x78c   : > { %v2005_v36 = vpop.f32.mrb[12].mxu1 }
 0x78d   : > { %v3705_v37 = vpop.f32.mrb[13].mxu1  ;;  %v2021_v38 = vsel %vm2011_vm4, %v2005_v36, -inf }
 0x78e   : > { %2022 = vmax.xlane.f32.xlu1 %v2021_v38  ;;  %v2008_v39 = vpop.f32.mrb[14].mxu1 }
 0x78f   : > { %v3706_v41 = vpop.f32.mrb[15].mxu1 }
 0x803   : > { %v2014_v42 = vpop.xlane.xlu1 %2013 }
 0x804   : > { %v2024_v43 = vsub.f32 %v1867_v21, %v2014_v42 }
 0x806   : > { %v2028_v44 = vmul.f32 1.442695, %v2024_v43 }
 0x808   : > { %4058 = vpow2.f32 %v2028_v44 }
 0x80b   : > { %v2017_v46 = vpop.xlane.xlu0 %2016 }
 0x80c   : > { %v2025_v47 = vsub.f32 %v1913_v62, %v2017_v46  ;;  %v3971_v62 = vld [vmem:[#allocation13 + $0x18] sm:$0xff]  }
 0x80d   : > { %3738 = vmatpush3.bf16.msra.mxu0 %v3971_v62 }
 0x80e   : > { %v2030_v48 = vmul.f32 1.442695, %v2025_v47  ;;  %3739 = vmatprep.subr.bf16.mxu0 %v4477_v40 }
 0x810   : > { %4060 = vpow2.f32 %v2030_v48 }
 0x811   : > { %3740 = vmatpush3.bf16.msra.mxu0 %v3972_v26 }
 0x812   : > { %v4059_v49 = vpop.eup %4058  ;;  %3741 = vmatprep.subr.bf16.mxu0 %v4477_v40 }
 0x813   : > { %v2020_v50 = vpop.xlane.xlu1 %2019  ;;  %v2036_v51 = vsel %vm2011_vm4, %v4059_v49, 0.0 }
 0x814   : > { %v2026_v45 = vsub.f32 %v1959_v31, %v2020_v50  ;;  %2037 = vadd.xlane.f32.xlu1 %v2036_v51 }
 0x815   : > { %3742 = vmatpush3.bf16.msra.mxu0 %v3973_v27 }
 0x816   : > { %v2032_v53 = vmul.f32 1.442695, %v2026_v45  ;;  %3743 = vmatprep.subr.bf16.mxu0 %v4477_v40 }
 0x818   : > { %4062 = vpow2.f32 %v2032_v53 }
 0x81a   : > { %v4061_v54 = vpop.eup %4060 }
 0x81b   : > { %v2023_v55 = vpop.xlane.xlu1 %2022  ;;  %v2039_v56 = vsel %vm2011_vm4, %v4061_v54, 0.0 }
 0x81c   : > { %v2027_v57 = vsub.f32 %v2005_v36, %v2023_v55  ;;  %2040 = vadd.xlane.f32.xlu1 %v2039_v56  ;;  %v3974_v55 = vld [vmem:[#allocation13 + $0x30] sm:$0xff]  }
 0x81d   : > { %3744 = vmatpush3.bf16.msra.mxu0 %v3974_v55  ;;  %v3997_v55 = vld [vmem:[#allocation15 + $0x68] ss:$16 sps:$4 sm:$0xff]  }
 0x81e   : > { %v2034_v58 = vmul.f32 1.442695, %v2027_v57  ;;  %3745 = vmatprep.subr.bf16.mxu0 %v4477_v40 }
 0x820   : > { %4064 = vpow2.f32 %v2034_v58 }
 0x822   : > { %v4063_v59 = vpop.eup %4062 }
 0x823   : > { %v2042_v60 = vsel %vm2011_vm4, %v4063_v59, 0.0 }
 0x824   : > { %2043 = vadd.xlane.f32.xlu1 %v2042_v60 }
 0x82a   : > { %v4065_v52 = vpop.eup %4064 }
 0x82b   : > { %v2045_v61 = vsel %vm2011_vm4, %v4065_v52, 0.0 }
 0x82c   : > { %2046 = vadd.xlane.f32.xlu0 %v2045_v61 }
 0x8a1   : > { %v2038_v0 = vpop.xlane.xlu1 %2037 }
 0x8a2   : > { %4066 = vrcp.f32 %v2038_v0  ;;  %v3975_v0 = vld [vmem:[#allocation13 + $0x38] sm:$0xff]  }
 0x8a3   : > { %3746 = vmatpush3.bf16.msra.mxu0 %v3975_v0  ;;  %v4014_v0 = vld [vmem:[#allocation15 + $0xc4] ss:$16 sps:$4 sm:$0xff]  }
 0x8a9   : > { %v2041_v1 = vpop.xlane.xlu1 %2040 }
 0x8aa   : > { %4068 = vrcp.f32 %v2041_v1 }
 0x8ac   : > { %v4067_v2 = vpop.eup %4066 }
 0x8ad   : > { %v2052_v3 = vmul.f32 %v4067_v2, %v4059_v49 }
 0x8af   : > { %v2056_v4 = vpack.c.bf16 %v2052_v3, %v2052_v3 }
 0x8b1   : > { %3710 = vmatmul.mubr.msk.bf16.vlgmr.msra.gmra.mrb[16].mxu1 %vm2011_vm4, %v2056_v4  ;;  %v2044_v7 = vpop.xlane.xlu1 %2043 }
 0x8b2   : > { %3714 = vmatpush3.bf16.msra.mxu1 %v1823_v6  ;;  %4070 = vrcp.f32 %v2044_v7  ;;  %3715 = vmatprep.mubr.msk.bf16.mxu1 %vm4478_vm2, %v4477_v40 }
 0x8b3   : > { %3719 = vmatprep.subr.bf16.mxu1 %v4477_v40 }
 0x8b4   : > { %v4069_v8 = vpop.eup %4068 }
 0x8b5   : > { %v2053_v9 = vmul.f32 %v4069_v8, %v4061_v54 }
 0x8b7   : > { %v2057_v11 = vpack.c.bf16 %v2053_v9, %v2053_v9 }
 0x8b9   : > { %v2047_v14 = vpop.xlane.xlu0 %2046  ;;  %3716 = vmatmul.mubr.msk.bf16.vlgmr.msra.gmra.mrb[20].mxu1 %vm2011_vm4, %v2057_v11 }
 0x8ba   : > { %4072 = vrcp.f32 %v2047_v14  ;;  %3720 = vmatpush3.bf16.msra.mxu1 %v1824_v12  ;;  %3721 = vmatprep.mubr.msk.bf16.mxu1 %vm4478_vm2, %v4477_v40 }
 0x8bb   : > { %3725 = vmatprep.subr.bf16.mxu1 %v4477_v40 }
 0x8bc   : > { %v4071_v16 = vpop.eup %4070 }
 0x8bd   : > { %v2054_v17 = vmul.f32 %v4071_v16, %v4063_v59 }
 0x8bf   : > { %v2058_v18 = vpack.c.bf16 %v2054_v17, %v2054_v17 }
 0x8c1   : > { %3722 = vmatmul.mubr.msk.bf16.vlgmr.msra.gmra.mrb[24].mxu1 %vm2011_vm4, %v2058_v18 }
 0x8c2   : > { %3726 = vmatpush3.bf16.msra.mxu1 %v1825_v20  ;;  %3727 = vmatprep.mubr.msk.bf16.mxu1 %vm4478_vm2, %v4477_v40 }
 0x8c4   : > { %v4073_v10 = vpop.eup %4072 }
 0x8c5   : > { %v2055_v21 = vmul.f32 %v4073_v10, %v4065_v52 }
 0x8c7   : > { %v2059_v22 = vpack.c.bf16 %v2055_v21, %v2055_v21 }
 0x8c9   : > { %3728 = vmatmul.mubr.msk.bf16.vlgmr.msra.gmra.mrb[28].mxu1 %vm2011_vm4, %v2059_v22 }
 0x8ca   : > { %2772 = vmatprep.mubr.bf16.mxu1 %v4484_v28 }
 0x984   : > { %v2097_v29 = vpop.f32.mrb[16].mxu1 }
 0x985   : > { %v3711_v30 = vpop.f32.mrb[17].mxu1 }
 0x986   : > { %v2100_v31 = vpop.f32.mrb[18].mxu1 }
 0x987   : > { %v3712_v32 = vpop.f32.mrb[19].mxu1 }
 0x98c   : > { %v2140_v33 = vpop.f32.mrb[20].mxu1 }
 0x98d   : > { %v3717_v34 = vpop.f32.mrb[21].mxu1 }
 0x98e   : > { %v2143_v35 = vpop.f32.mrb[22].mxu1 }
 0x98f   : > { %v3718_v36 = vpop.f32.mrb[23].mxu1 }
 0x990   : > { %v3976_v36 = vld [vmem:[#allocation15] ss:$16 sps:$4 sm:$0xff]  }
 0x994   : > { %v2183_v37 = vpop.f32.mrb[24].mxu1 }
 0x995   : > { %v2232_v38 = vcombine.low %v2097_v29, %v2183_v37  ;;  %v2233_v39 = vcombine.high %v2097_v29, %v2183_v37  ;;  %v3723_v41 = vpop.f32.mrb[25].mxu1  ;;  %v3445_v29 = vld [vmem:[%s5407_s8] ss:$0 sm:$0xff]  ;;  %v3978_v37 = vld [vmem:[#allocation15 + $0x4] ss:$16 sps:$4 sm:$0xff]   ;;  %s5413_s8 = sld [smem:[#allocation45_spill]] }
 0x996   : > { %v2186_v42 = vpop.f32.mrb[26].mxu1  ;;  %v3984_v41 = vld [vmem:[#allocation15 + $0x24] ss:$16 sps:$4 sm:$0xff]   ;;  %2740 = vmatprep.subr.bf16.mxu1 %v3978_v37 }
 0x997   : > { %v3724_v43 = vpop.f32.mrb[27].mxu1  ;;  %v2240_v50 = vrot.slane %v2232_v38, %v5130_v15  ;;  %v2247_v51 = vrot.slane %v2233_v39, %v5130_v15  ;;  %v3979_v38 = vld [vmem:[#allocation15 + $0x8] ss:$16 sps:$4 sm:$0xff]   ;;  %v3981_v39 = vld [vmem:[#allocation15 + $0xc] ss:$16 sps:$4 sm:$0xff]   ;;  %2741 = vmatpush1.bf16.msra.mxu1 %v3976_v36  ;;  %v4040_v36 = vld [vmem:[#allocation16 + $0x60] sm:$0xff]  }
 0x998   : > { %2781 = vmatprep.subr.bf16.mxu0 %v3981_v39  ;;  %v3982_v42 = vld [vmem:[#allocation15 + $0x20] ss:$16 sps:$4 sm:$0xff]   ;;  %2742 = vmatprep.subr.bf16.mxu1 %v3984_v41  ;;  %v3985_v43 = vld [vmem:[#allocation15 + $0x28] ss:$16 sps:$4 sm:$0xff]  }
 0x999   : > { %v4041_v37 = vld [vmem:[#allocation16 + $0xe0] sm:$0xff]   ;;  %v4044_v41 = vld [vmem:[#allocation16 + $0x68] sm:$0xff]  }
 0x99a   : > { %v4043_v39 = vld [vmem:[#allocation16 + $0xa0] sm:$0xff]  }
 0x99b   : > { %2743 = vmatpush1.bf16.msra.mxu1 %v3982_v42  ;;  %v4046_v42 = vld [vmem:[#allocation16 + $0x28] sm:$0xff]  }
 0x99c   : > { %v2226_v44 = vpop.f32.mrb[28].mxu1 }
 0x99d   : > { %v2248_v46 = vcombine.low %v2140_v33, %v2226_v44  ;;  %v2249_v47 = vcombine.high %v2140_v33, %v2226_v44  ;;  %v3729_v48 = vpop.f32.mrb[29].mxu1  ;;  %v3990_v44 = vld [vmem:[#allocation15 + $0x44] ss:$16 sps:$4 sm:$0xff]  }
 0x99e   : > { %v2229_v49 = vpop.f32.mrb[30].mxu1  ;;  %2744 = vmatprep.subr.bf16.mxu1 %v3990_v44  ;;  %v4048_v44 = vld [vmem:[#allocation16 + $0x70] sm:$0xff]  }
 0x99f   : > { %v2256_v45 = vrot.slane %v2248_v46, %v5130_v15  ;;  %v2263_v53 = vrot.slane %v2249_v47, %v5130_v15  ;;  %v3730_v54 = vpop.f32.mrb[31].mxu1  ;;  %v3988_v46 = vld [vmem:[#allocation15 + $0x40] ss:$16 sps:$4 sm:$0xff]   ;;  %v3991_v47 = vld [vmem:[#allocation15 + $0x48] ss:$16 sps:$4 sm:$0xff]  }
 0x9a0   : > { %2745 = vmatpush1.bf16.msra.mxu1 %v3988_v46  ;;  %v3994_v54 = vld [vmem:[#allocation15 + $0x60] ss:$16 sps:$4 sm:$0xff]  }
 0x9a1   : > { %v2264_v56 = vcombine.low %v2240_v50, %v2256_v45  ;;  %v2265_v57 = vcombine.high %v2240_v50, %v2256_v45  ;;  %v2280_v58 = vcombine.low %v2247_v51, %v2263_v53  ;;  %v2281_v59 = vcombine.high %v2247_v51, %v2263_v53  ;;  %v3996_v45 = vld [vmem:[#allocation15 + $0x64] ss:$16 sps:$4 sm:$0xff]   ;;  %v3999_v53 = vld [vmem:[#allocation15 + $0x6c] ss:$16 sps:$4 sm:$0xff]  }
 0x9a2   : > { %2746 = vmatprep.subr.bf16.mxu1 %v3996_v45  ;;  %v4050_v46 = vld [vmem:[#allocation16 + $0x30] sm:$0xff]   ;;  %v2562_v45 = vsub.s32 0, %v5127_v13 }
 0x9a3   : > { %v2272_v60 = vrot.slane %v2264_v56, %v5134_v19  ;;  %v2279_v52 = vrot.slane %v2265_v57, %v5134_v19  ;;  %v2288_v61 = vrot.slane %v2280_v58, %v5134_v19  ;;  %v2295_v63 = vrot.slane %v2281_v59, %v5134_v19  ;;  %v4002_v56 = vld [vmem:[#allocation15 + $0x84] ss:$16 sps:$4 sm:$0xff]   ;;  %v4005_v57 = vld [vmem:[#allocation15 + $0x8c] ss:$16 sps:$4 sm:$0xff]   ;;  %v4000_v58 = vld [vmem:[#allocation15 + $0x80] ss:$16 sps:$4 sm:$0xff]  }
 0x9a4   : > { %2747 = vmatpush1.bf16.msra.mxu1 %v3994_v54  ;;  %v4003_v59 = vld [vmem:[#allocation15 + $0x88] ss:$16 sps:$4 sm:$0xff]   ;;  %v2558_v54 = vld [vmem:[%s5410_s18] sm:$0xf] }
 0x9a5   : > { %v2300_v1 = vcombine.low %v2272_v60, %v2279_v52  ;;  %v3443_v2 = vcombine.high %v2272_v60, %v2279_v52  ;;  %v2316_v3 = vcombine.low %v2288_v61, %v2295_v63  ;;  %v3444_v4 = vcombine.high %v2288_v61, %v2295_v63  ;;  %2748 = vmatprep.subr.bf16.mxu1 %v4002_v56  ;;  %v4008_v60 = vld [vmem:[#allocation15 + $0xa4] ss:$16 sps:$4 sm:$0xff]   ;;  %v4011_v52 = vld [vmem:[#allocation15 + $0xac] ss:$16 sps:$4 sm:$0xff]   ;;  %v4006_v61 = vld [vmem:[#allocation15 + $0xa0] ss:$16 sps:$4 sm:$0xff]  }
 0x9a6   : > { %v4009_v63 = vld [vmem:[#allocation15 + $0xa8] ss:$16 sps:$4 sm:$0xff]   ;;  %v2574_v56 = vsub.s32 3, %v5127_v13 }
 0x9a7   : > { %v2307_v6 = vrot.slane %v2300_v1, %v5130_v15  ;;  %v2315_v7 = vrot.slane %v3443_v2, %v5130_v15  ;;  %v2323_v8 = vrot.slane %v2316_v3, %v5130_v15  ;;  %v2331_v9 = vrot.slane %v3444_v4, %v5130_v15  ;;  %v4017_v1 = vld [vmem:[#allocation15 + $0xcc] ss:$16 sps:$4 sm:$0xff]   ;;  %v4012_v2 = vld [vmem:[#allocation15 + $0xc0] ss:$16 sps:$4 sm:$0xff]   ;;  %v4015_v3 = vld [vmem:[#allocation15 + $0xc8] ss:$16 sps:$4 sm:$0xff]  }
 0x9a8   : > { %2749 = vmatpush1.bf16.msra.mxu1 %v4000_v58  ;;  %v4020_v4 = vld [vmem:[#allocation15 + $0xe4] ss:$16 sps:$4 sm:$0xff]  }
 0x9a9   : > { %v2333_v11 = vcombine.high %v2307_v6, %v2315_v7  ;;  %v2349_v12 = vcombine.high %v2323_v8, %v2331_v9  ;;  %v2332_v14 = vcombine.low %v2307_v6, %v2315_v7  ;;  %v2348_v16 = vcombine.low %v2323_v8, %v2331_v9  ;;  %2750 = vmatprep.subr.bf16.mxu1 %v4008_v60  ;;  %v4018_v6 = vld [vmem:[#allocation15 + $0xe0] ss:$16 sps:$4 sm:$0xff]   ;;  %v4021_v7 = vld [vmem:[#allocation15 + $0xe8] ss:$16 sps:$4 sm:$0xff]   ;;  %v4023_v8 = vld [vmem:[#allocation15 + $0xec] ss:$16 sps:$4 sm:$0xff]  }
 0x9aa   : > { %v4024_v9 = vld [vmem:[#allocation16 + $0x40] sm:$0xff]   ;;  %v2575_v60 = vrot.slane %v2558_v54, %v2574_v56 }
 0x9ab   : > { %v2347_v40 = vrot.slane %v2333_v11, %v5134_v19  ;;  %v2363_v17 = vrot.slane %v2349_v12, %v5134_v19  ;;  %v2340_v18 = vrot.slane %v2332_v14, %v5134_v19  ;;  %v2356_v20 = vrot.slane %v2348_v16, %v5134_v19  ;;  %v4025_v11 = vld [vmem:[#allocation16 + $0xc0] sm:$0xff]  }
 0x9ac   : > { %2751 = vmatpush1.bf16.msra.mxu1 %v4006_v61 }
 0x9ad   : > { %v2366_v10 = vcombine.low %v2347_v40, %v2363_v17  ;;  %v2365_v21 = vcombine.high %v2340_v18, %v2356_v20  ;;  %v2367_v22 = vcombine.high %v2347_v40, %v2363_v17  ;;  %v2364_v23 = vcombine.low %v2340_v18, %v2356_v20  ;;  %2752 = vmatprep.subr.bf16.mxu1 %v4014_v0  ;;  %v3454_v17 = vld [vmem:[%s5408_s7] ss:$0 sm:$0xff]  ;;  %s3207_s7 = sshll.u32 %s4988_s14, 4  ;;  %s5256_s7 = int_to_ptr.vmem [resolvable:$true] %s3207_s7 }
 0x9ae   : > { %v3455_v20 = vld [vmem:[%s5409_s10] ss:$0 sm:$0xff]  ;;  %s5414_s10 = sld [smem:[#allocation46_spill]]  ;;  %s4312_s18 = scalar_lea.vmem %s5256_s7, 128 }
 0x9af   : > { %2373 = vrot.lane.b32.xlu0 %v2366_v10, %s4481_s13  ;;  %2369 = vrot.lane.b32.xlu1 %v2365_v21, %s4479_s29  ;;  %s5411_s29 = sld [smem:[#allocation28_spill]]  ;;  %p4313_p1 = scmp.ne.s32.totalorder %s5256_s7, %s4312_s18 }
 0x9b0   : > { %2753 = vmatpush1.bf16.msra.mxu1 %v4012_v2 }
 0x9b1   : > { %2754 = vmatprep.subr.bf16.mxu1 %v4020_v4  ;;  %p4314_p7 = pnand %p4313_p1, %p5415_p8 }
 0x9b3   : > { %2377 = vrot.lane.b32.xlu1 %v2367_v22, %s4480_s30  ;;  %v4026_v22 = vld [vmem:[#allocation16] sm:$0xff]   ;;  %s5412_s30 = sld [smem:[#allocation27_spill]]  ;;  %p4315_p6 = pneg %p4314_p7 }
 0x9b4   : > { %2755 = vmatpush1.bf16.msra.mxu1 %v4018_v6 }
 0x9b5   : > { %3579 = vmatprep.subr.bf16.mxu1 %v4024_v9  ;;  %s3522_s13 = sshll.u32 %s5411_s29, 1  ;;  %s4485_s29 = smov [#allocation18]  }
 0x9b9   : > { %s3203_s2 = sadd.s32 %s5412_s30, %s3522_s13  ;;  %s4316_s30 = sshll.u32 %s4485_s29, 4  ;;  %s4317_s30 = int_to_ptr.vmem [resolvable:$false] %s4316_s30 }
 0x9ba   : > { %s3523_s12 = sshll.u32 %s3203_s2, 7  ;;  %s4318_s13 = scalar_lea.vmem %s4317_s30, 256 }
 0x9bb   : > { %s5254_s0 = scalar_lea.hbm %s5414_s10, %s3523_s12  ;;  %p4319_p11 = scmp.lt.s32.totalorder %s5256_s7, %s4317_s30 }
 0x9bc   : > { %p4320_p10 = scmp.lt.s32.totalorder %s4318_s13, %s4312_s18 }
 0x9be   : > { %p4321_p5 = por %p4320_p10, %p4319_p11 }
 0x9c0   : > { %p4322_p4 = pnand %p4321_p5, %p4315_p6 }
 0xa21   : > { %v2370_v15 = vpop.permute.xlu1 %2369  ;;  %v2374_v24 = vpop.permute.xlu0 %2373 }
 0xa22   : > { %v2380_v25 = vsel %vm1826_vm3, %v2364_v23, %v2370_v15  ;;  %v4027_v23 = vld [vmem:[#allocation16 + $0x80] sm:$0xff]  }
 0xa23   : > { %v2382_v26 = vsel %vm2381_vm5, %v2380_v25, %v2374_v24  ;;  %v4028_v24 = vld [vmem:[#allocation16 + $0x48] sm:$0xff]  }
 0xa24   : > { %v4029_v25 = vld [vmem:[#allocation16 + $0xc8] sm:$0xff]  }
 0xa25   : > { %v2378_v62 = vpop.permute.xlu1 %2377 }
 0xa26   : > { %v2384_v27 = vsel %vm2383_vm6, %v2382_v26, %v2378_v62  ;;  %v4030_v62 = vld [vmem:[#allocation16 + $0x8] sm:$0xff]  }
 0xa27   : > { %v2385_v19 = vpack.c.bf16 %v2384_v27, %v2384_v27  ;;  %v4031_v26 = vld [vmem:[#allocation16 + $0x88] sm:$0xff]   ;;  %v4032_v27 = vld [vmem:[#allocation16 + $0x50] sm:$0xff]  }
 0xa29   : > { %3748 = vmatmul.mubr.bf16.vlgmr.msra.gmra.mrb[4].mxu0 %v2385_v19  ;;  %v4033_v19 = vld [vmem:[#allocation16 + $0xd0] sm:$0xff]  }
 0xa2a   : > { %2813 = vmatprep.mubr.bf16.mxu0 %v4484_v28  ;;  %v3987_v28 = vld [vmem:[#allocation15 + $0x2c] ss:$16 sps:$4 sm:$0xff]   ;;  %2782 = vmatpush1.bf16.msra.mxu0 %v3979_v38  ;;  %v4042_v38 = vld [vmem:[#allocation16 + $0x20] sm:$0xff]  }
 0xa2b   : > { %2783 = vmatprep.subr.bf16.mxu0 %v3987_v28  ;;  %v4045_v28 = vld [vmem:[#allocation16 + $0xe8] sm:$0xff]  }
 0xa2e   : > { %2784 = vmatpush1.bf16.msra.mxu0 %v3985_v43  ;;  %v4047_v43 = vld [vmem:[#allocation16 + $0xa8] sm:$0xff]  }
 0xafc   : > { %v2491_v30 = vpop.f32.mrb[4].mxu0 }
 0xafd   : > { %v2492_v31 = vadd.f32 %v3445_v29, %v2491_v30  ;;  %v3749_v32 = vpop.f32.mrb[5].mxu0  ;;  %v4034_v29 = vld [vmem:[#allocation16 + $0x10] sm:$0xff]  }
 0xafe   : > { %v2494_v33 = vpop.f32.mrb[6].mxu0  ;;  %v4035_v30 = vld [vmem:[#allocation16 + $0x90] sm:$0xff]   ;;  %v4037_v32 = vld [vmem:[#allocation16 + $0xd8] sm:$0xff]  }
 0xaff   : > { %v5227_v34 = vadd.f32 %v2492_v31, %v5096_v5  ;;  %v3750_v35 = vpop.f32.mrb[7].mxu0  ;;  %v3993_v5 = vld [vmem:[#allocation15 + $0x4c] ss:$16 sps:$4 sm:$0xff]  }
 0xb00   : > { %2785 = vmatprep.subr.bf16.mxu0 %v3993_v5  ;;  %v4036_v31 = vld [vmem:[#allocation16 + $0x58] sm:$0xff]   ;;  %v4049_v5 = vld [vmem:[#allocation16 + $0xf0] sm:$0xff]  }
 0xb01   : > { %2500 = vadd.xlane.f32.xlu1 %v5227_v34  ;;  %2786 = vmatpush1.bf16.msra.mxu0 %v3991_v47  ;;  %v4038_v33 = vld [vmem:[#allocation16 + $0x18] sm:$0xff]   ;;  %v4051_v47 = vld [vmem:[#allocation16 + $0xb0] sm:$0xff]  }
 0xb02   : > { %2787 = vmatprep.subr.bf16.mxu0 %v3999_v53  ;;  %v4039_v35 = vld [vmem:[#allocation16 + $0x98] sm:$0xff]   ;;  %v2570_v53 = vsub.s32 2, %v5127_v13 }
 0xb04   : > { %v2571_v58 = vrot.slane %v2558_v54, %v2570_v53 }
 0xb05   : > { %2788 = vmatpush1.bf16.msra.mxu0 %v3997_v55  ;;  %v2566_v55 = vsub.s32 1, %v5127_v13 }
 0xb06   : > { %2789 = vmatprep.subr.bf16.mxu0 %v4005_v57  ;;  %v2563_v57 = vrot.slane %v2558_v54, %v2562_v45 }
 0xb09   : > { %2790 = vmatpush1.bf16.msra.mxu0 %v4003_v59  ;;  %v2567_v59 = vrot.slane %v2558_v54, %v2566_v55 }
 0xb0a   : > { %2791 = vmatprep.subr.bf16.mxu0 %v4011_v52 }
 0xb0d   : > { %2792 = vmatpush1.bf16.msra.mxu0 %v4009_v63 }
 0xb0e   : > { %2793 = vmatprep.subr.bf16.mxu0 %v4017_v1 }
 0xb11   : > { %2794 = vmatpush1.bf16.msra.mxu0 %v4015_v3 }
 0xb12   : > { %2795 = vmatprep.subr.bf16.mxu0 %v4023_v8 }
 0xb15   : > { %2796 = vmatpush1.bf16.msra.mxu0 %v4021_v7 }
 0xb16   : > { %3601 = vmatprep.subr.bf16.mxu0 %v4025_v11 }
 0xb8e   : > { %v2501_v48 = vpop.xlane.xlu1 %2500 }
 0xb8f   : > { %v2502_v49 = vmul.f32 0.0078125, %v2501_v48  ;;  %v4052_v48 = vld [vmem:[#allocation16 + $0x78] sm:$0xff]  }
 0xb91   : > { %v2503_v50 = vsub.f32 %v5227_v34, %v2502_v49  ;;  %v4053_v49 = vld [vmem:[#allocation16 + $0xf8] sm:$0xff]  }
 0xb93   : > { %v2504_v51 = vmul.f32 %v2503_v50, %v2503_v50 }
 0xb95   : > { %2505 = vadd.xlane.f32.xlu0 %v2504_v51  ;;  %v4055_v51 = vld [vmem:[#allocation16 + $0xb8] sm:$0xff]  }
 0xc22   : > { %v2506_v12 = vpop.xlane.xlu0 %2505 }
 0xc23   : > { %v2507_v14 = vmul.f32 0.0078125, %v2506_v12 }
 0xc25   : > { %v2508_v16 = vadd.f32 1e-05, %v2507_v14 }
 0xc27   : > { %4074 = vrsqrt.f32 %v2508_v16 }
 0xc31   : > { %v4075_v40 = vpop.eup %4074 }
 0xc32   : > { %v2510_v18 = vmul.f32 %v4075_v40, %v2503_v50  ;;  %v4054_v50 = vld [vmem:[#allocation16 + $0x38] sm:$0xff]  }
 0xc34   : > { %v2517_v10 = vmul.f32 %v3454_v17, %v2510_v18 }
 0xc36   : > { %v2524_v21 = vadd.f32 %v3455_v20, %v2517_v10 }
 0xc38   : > { %v2525_v15 = vpack.c.bf16 %v2524_v21, %v2524_v21 }
 0xc3a   : > { %2773 = vmatmul.mubr.bf16.vlgmr.msra.gmra.mrb[32].mxu1 %v2525_v15  ;;  %2814 = vmatmul.mubr.bf16.vlgmr.msra.gmra.mrb[8].mxu0 %v2525_v15 }
 0xc3b   : > { %3580 = vmatpush3.bf16.msra.mxu1 %v4026_v22  ;;  %3602 = vmatpush3.bf16.msra.mxu0 %v4027_v23 }
 0xc3c   : > { %3581 = vmatprep.subr.bf16.mxu1 %v4028_v24  ;;  %3603 = vmatprep.subr.bf16.mxu0 %v4029_v25 }
 0xc3f   : > { %3582 = vmatpush3.bf16.msra.mxu1 %v4030_v62  ;;  %3604 = vmatpush3.bf16.msra.mxu0 %v4031_v26 }
 0xc40   : > { %3583 = vmatprep.subr.bf16.mxu1 %v4032_v27  ;;  %3605 = vmatprep.subr.bf16.mxu0 %v4033_v19 }
 0xc43   : > { %3584 = vmatpush3.bf16.msra.mxu1 %v4034_v29  ;;  %3606 = vmatpush3.bf16.msra.mxu0 %v4035_v30 }
 0xc44   : > { %3585 = vmatprep.subr.bf16.mxu1 %v4036_v31  ;;  %3607 = vmatprep.subr.bf16.mxu0 %v4037_v32 }
 0xc47   : > { %3586 = vmatpush3.bf16.msra.mxu1 %v4038_v33  ;;  %3608 = vmatpush3.bf16.msra.mxu0 %v4039_v35 }
 0xc48   : > { %3587 = vmatprep.subr.bf16.mxu1 %v4040_v36  ;;  %3609 = vmatprep.subr.bf16.mxu0 %v4041_v37  ;;  %v3488_v36 = vld [vmem:[%s5413_s8] ss:$0 sm:$0xff] }
 0xc4b   : > { %3588 = vmatpush3.bf16.msra.mxu1 %v4042_v38  ;;  %3610 = vmatpush3.bf16.msra.mxu0 %v4043_v39 }
 0xc4c   : > { %3589 = vmatprep.subr.bf16.mxu1 %v4044_v41  ;;  %3611 = vmatprep.subr.bf16.mxu0 %v4045_v28 }
 0xc4f   : > { %3590 = vmatpush3.bf16.msra.mxu1 %v4046_v42  ;;  %3612 = vmatpush3.bf16.msra.mxu0 %v4047_v43 }
 0xc50   : > { %3591 = vmatprep.subr.bf16.mxu1 %v4048_v44  ;;  %3613 = vmatprep.subr.bf16.mxu0 %v4049_v5 }
 0xc53   : > { %3592 = vmatpush3.bf16.msra.mxu1 %v4050_v46  ;;  %3614 = vmatpush3.bf16.msra.mxu0 %v4051_v47 }
 0xc54   : > { %3593 = vmatprep.subr.bf16.mxu1 %v4052_v48  ;;  %3615 = vmatprep.subr.bf16.mxu0 %v4053_v49 }
 0xc57   : > { %3594 = vmatpush3.bf16.msra.mxu1 %v4054_v50  ;;  %3616 = vmatpush3.bf16.msra.mxu0 %v4055_v51 }
 0xd0d   : > { %v2774_v52 = vpop.f32.mrb[32].mxu1  ;;  %v2815_v61 = vpop.f32.mrb[8].mxu0 }
 0xd0e   : > { %v2775_v63 = vadd.f32 %v2774_v52, %v2563_v57  ;;  %v2816_v0 = vadd.f32 %v2815_v61, %v2571_v58  ;;  %v2776_v1 = vpop.f32.mrb[33].mxu1  ;;  %v2817_v2 = vpop.f32.mrb[9].mxu0 }
 0xd0f   : > { %v2777_v3 = vadd.f32 %v2776_v1, %v2567_v59  ;;  %v2818_v4 = vadd.f32 %v2817_v2, %v2575_v60  ;;  %v2778_v6 = vpop.f32.mrb[34].mxu1  ;;  %v2819_v7 = vpop.f32.mrb[10].mxu0 }
 0xd10   : > { %v2826_v8 = vmul.f32 0.70710677, %v2775_v63  ;;  %v2828_v9 = vmul.f32 0.70710677, %v2816_v0  ;;  %v2779_v13 = vpop.f32.mrb[35].mxu1  ;;  %v2820_v14 = vpop.f32.mrb[11].mxu0 }
 0xd11   : > { %v2827_v11 = vmul.f32 0.70710677, %v2777_v3  ;;  %v2829_v12 = vmul.f32 0.70710677, %v2818_v4  ;;  %v2822_v20 = vmul.f32 0.5, %v2775_v63  ;;  %v2824_v22 = vmul.f32 0.5, %v2816_v0 }
 0xd12   : > { %4076 = verf.f32 %v2826_v8  ;;  %v2823_v23 = vmul.f32 0.5, %v2777_v3  ;;  %v2825_v25 = vmul.f32 0.5, %v2818_v4 }
 0xd13   : > { %4078 = verf.f32 %v2828_v9 }
 0xd14   : > { %4080 = verf.f32 %v2827_v11 }
 0xd15   : > { %4082 = verf.f32 %v2829_v12 }
 0xd1c   : > { %v4077_v16 = vpop.eup %4076 }
 0xd1d   : > { %v4079_v40 = vpop.eup %4078  ;;  %v2834_v17 = vadd.f32 1.0, %v4077_v16 }
 0xd1e   : > { %v4081_v18 = vpop.eup %4080  ;;  %v2836_v10 = vadd.f32 1.0, %v4079_v40 }
 0xd1f   : > { %v4083_v21 = vpop.eup %4082  ;;  %v2835_v15 = vadd.f32 1.0, %v4081_v18  ;;  %v2838_v24 = vmul.f32 %v2834_v17, %v2822_v20 }
 0xd20   : > { %v2837_v62 = vadd.f32 1.0, %v4083_v21  ;;  %v2840_v26 = vmul.f32 %v2836_v10, %v2824_v22 }
 0xd21   : > { %v2839_v27 = vmul.f32 %v2835_v15, %v2823_v23  ;;  %v2842_v30 = vpack.c.bf16 %v2838_v24, %v2838_v24 }
 0xd22   : > { %v2841_v19 = vmul.f32 %v2837_v62, %v2825_v25  ;;  %v2844_v32 = vpack.c.bf16 %v2840_v26, %v2840_v26 }
 0xd23   : > { %v2843_v29 = vpack.c.bf16 %v2839_v27, %v2839_v27 }
 0xd24   : > { %v2845_v31 = vpack.c.bf16 %v2841_v19, %v2841_v19 }
 0xd25   : > { %3141 = vmatprep.mubr.bf16.mxu1 %v2843_v29 }
 0xd26   : > { %3181 = vmatprep.mubr.bf16.mxu0 %v2845_v31  ;;  %3142 = vmatmul.mubr.bf16.vlgmr.msra.gmra.mrb[36].mxu1 %v2842_v30 }
 0xd27   : > { %3182 = vmatmul.mubr.bf16.vlgmr.msra.gmra.mrb[12].mxu0 %v2844_v32 }
 0xdf9   : > { %v3595_v33 = vpop.f32.mrb[36].mxu1 }
 0xdfa   : > { %v3617_v35 = vpop.f32.mrb[12].mxu0  ;;  %v3596_v37 = vpop.f32.mrb[37].mxu1 }
 0xdfb   : > { %v3597_v38 = vadd.f32 %v3596_v37, %v3595_v33  ;;  %v3618_v39 = vpop.f32.mrb[13].mxu0  ;;  %v3598_v41 = vpop.f32.mrb[38].mxu1 }
 0xdfc   : > { %v3619_v28 = vadd.f32 %v3618_v39, %v3617_v35  ;;  %v3620_v42 = vpop.f32.mrb[14].mxu0  ;;  %v3599_v43 = vpop.f32.mrb[39].mxu1 }
 0xdfd   : > { %v3144_v44 = vadd.f32 %v3597_v38, %v3488_v36  ;;  %v3621_v5 = vpop.f32.mrb[15].mxu0 }
 0xdff   : > { %v3184_v46 = vadd.f32 %v3619_v28, %v3144_v44 }
 0xe01   : > { %v3189_v47 = vadd.f32 %v3184_v46, %v5227_v34 }
 0xe03   : > { %3190 = vst [vmem:[%s4988_s14] sm:$0xff] %v3189_v47 }
 0xe04   : > { %4325 = shalt.err (!%p4322_p4)
}
 0xe05   : > { %s4326_s16 = scalar_lea.hbm %s5254_s0, 128  ;;  %s4330_s11 = scalar_lea.hbm %s5414_s10, 512 }
 0xe06   : > { %p4327_p12 = scmp.ne.s32.totalorder %s5254_s0, %s4326_s16  ;;  %p4331_p13 = scmp.lt.u32.totalorder %s5254_s0, %s5414_s10 }
 0xe07   : > { %p4332_p0 = scmp.lt.u32.totalorder %s4330_s11, %s4326_s16  ;;  %p4334_p1 = scmp.lt.u32.totalorder %s4326_s16, %s5254_s0 }
 0xe08   : > { %p4328_p9 = pnand %p4327_p12, %p5415_p8 }
 0xe09   : > { %p4333_p2 = por %p4332_p0, %p4331_p13 }
 0xe0a   : > { %p4329_p3 = pneg %p4328_p9 }
 0xe0b   : > { %p4335_p7 = por %p4334_p1, %p4333_p2 }
 0xe0d   : > { %p4336_p6 = pnand %p4335_p7, %p4329_p3 }
 0xe0f   : > { %4339 = shalt.err (!%p4336_p6)
}
 0xe10   : > { %3779 = dma.vmem_to_hbm [thread:$0]  (%p5415_p8), %s5256_s7, 128, %s5254_s0, %s3192_s15  }
 0xe11 PF: > { %p3824_p11 = scmp.ge.s32.totalorder %s4454_s28, 2  ;;  %s3219_s12 = sand.u32 1, %s4426_s21  }
 0xe12   : > { %p5416_p10 = scmp.ne.s32.totalorder %s5385_s4, 0  ;;  %s3220_s1 = scalar_lea.sflag [#allocation6], %s3219_s12 }
 0xe14   : > { %p3808_p5 = pnand %p3824_p11, %p5416_p10 }
 0xe16   : > { %4409 = dma.done.wait (!%p3808_p5), %s3220_s1, 128  }
 0xe17   : > { %4411 = vsyncadd (!%p3808_p5), %s3220_s1, 4294967168  ;;  %s37_s28 = sadd.s32 1, %s4454_s28   ;;  %s5417_s3 = smov %s5430_s24 }
 0xe18   : > { %p34_p4 = scmp.ge.s32.totalorder %s37_s28, 6   ;;  %s5418_s7 = sld [smem:[#allocation30_spill]] }
 0xe19   : > { %s5419_s18 = smov %s4418_s19  ;;  %s5420_s19 = smov %s4422_s20 }
 0xe1a   : > { %s5421_s20 = smov %s4833_s25  ;;  %s5422_s21 = smov %s4430_s22 }
 0xe1b   : > { %s5423_s22 = smov %s4434_s23  ;;  %s5424_s23 = smov %s4836_s9 }
 0xe1c   : > { %s5425_s24 = smov %s4446_s26  ;;  %s5426_s25 = smov %s4450_s27 }
 0xe1d   : > { %s5427_s26 = smov %s5417_s3  ;;  %36 = sbr.rel (!%p34_p4) target bundleno = 31 (0x1f), region = 166 }
 0xe1e   : > { %s5428_s27 = smov %s5418_s7 }
 0xe24   :  { %3225 = vsyncpa [#allocation5], 1 }
 0xe25   :  { %3227 = vsyncpa [#allocation5 + $0x1], 1 }
 0xe26   :  { %3228 = vsyncpa [#allocation8], 1 }
 0xe27   :  { %3230 = vsyncpa [#allocation8 + $0x1], 1 }
 0xe28   :  { %3231 = vsyncpa [#allocation11], 1 }
 0xe29   :  { %3232 = vsyncpa [#allocation14], 1 }
 0xe2a   :  { %3233 = vsyncpa [#allocation17], 1 }
 0xe2b   :  { %3234 = vsyncpa [#allocation6], 1 }
 0xe2c   :  { %3236 = vsyncpa [#allocation6 + $0x1], 1 }

</bundles_post_ra>
